<compile_context>
chip_gen: v7x
topology: tpu7x:2x2x1
jax: 0.10.0
libtpu: 0.0.40
codegen_flags: <defaults>
</compile_context>

<pallas_src>
import functools

import jax
import jax.numpy as jnp
from jax.experimental import pallas as pl
from jax.experimental.pallas import tpu as pltpu

BN_EPS = 1e-5
_LANE = 128


def _round_up(x, m):
    return ((x + m - 1) // m) * m


# ----------------------------------------------------------------------------
# Fused Pallas kernel: all GIN layers + node classifier
# ----------------------------------------------------------------------------
def _gin_fused_kernel(a_ref, h0_ref, w1_ref, b1_ref, w2_ref, b2_ref,
                      wc_ref, bc_ref, o_ref, h_scr, acc_scr, *, n_pad, tm, tk):
    l = pl.program_id(0)          # layer (sequential, carries state)
    i = pl.program_id(1)          # row (node) tile
    k = pl.program_id(2)          # reduction tile over neighbour columns
    nl = pl.num_programs(0)
    nk = pl.num_programs(2)

    # Double-buffered h carry: layer l reads rows [read_base, read_base+n_pad)
    # of h_scr (layer 0 reads the h0 input block directly instead) and writes
    # rows [write_base, write_base+n_pad).
    read_base = (l % 2) * n_pad
    write_base = n_pad - read_base

    def accumulate(h_blk):
        contrib = jnp.dot(a_ref[...], h_blk,
                          preferred_element_type=jnp.float32)

        # First reduction step writes (no zero-fill pass), later steps add.
        @pl.when(k == 0)
        def _():
            acc_scr[...] = contrib

        @pl.when(k > 0)
        def _():
            acc_scr[...] += contrib

    # ---- aggregation: (A + I) @ h, tiled over the reduction axis ----
    @pl.when(l == 0)
    def _():
        col0 = pl.multiple_of(k * tk, tk)
        accumulate(h0_ref[pl.ds(col0, tk), :])

    @pl.when(l > 0)
    def _():
        col0 = pl.multiple_of(read_base + k * tk, tk)
        accumulate(h_scr[pl.ds(col0, tk), :])

    # ---- MLP with folded BatchNorm + ReLU once the reduction finishes ----
    @pl.when(k == nk - 1)
    def _():
        agg = acc_scr[...]                                  # f32 (tm, D)
        z = jnp.dot(agg.astype(jnp.bfloat16), w1_ref[0],
                    preferred_element_type=jnp.float32)
        z = jnp.maximum(z + b1_ref[0], 0.0)                 # BN_mlp folded into W1/b1
        y = jnp.dot(z.astype(jnp.bfloat16), w2_ref[0],
                    preferred_element_type=jnp.float32)
        h_new = jnp.maximum(y + b2_ref[0], 0.0)             # BN_layer folded into W2/b2

        # Store the carry only when a later layer will consume it.
        @pl.when(l < nl - 1)
        def _():
            row0 = pl.multiple_of(write_base + i * tm, tm)
            h_scr[pl.ds(row0, tm), :] = h_new.astype(jnp.bfloat16)

        # Final layer: classifier straight from the in-register h_new (no
        # h_scr store/reload).
        # TODO(synk): Dropout(0.5) is the identity in eval mode; training-mode
        # RNG dropout is intentionally not implemented here.
        @pl.when(l == nl - 1)
        def _():
            o_ref[...] = (jnp.dot(h_new.astype(jnp.bfloat16), wc_ref[...],
                                  preferred_element_type=jnp.float32)
                          + bc_ref[...])


# ----------------------------------------------------------------------------
# Host-side parameter preparation: BN folding, transpose, pad, stack, cast
# ----------------------------------------------------------------------------
def _fold_bn(w, gamma, beta, mean, var):
    """Fold eval-mode BatchNorm1d into the preceding bias-free Linear.

    `w` is the PyTorch Linear weight (out, in).  Returns (w_t, bias) with
    w_t of shape (in, out) so the kernel computes x @ w_t + bias.
    """
    scale = gamma * jax.lax.rsqrt(var + BN_EPS)
    return w.T * scale[None, :], beta - mean * scale


def prepare_params(raw, d_pad, c_pad):
    hidden_dim = raw["layers"][0]["w1"].shape[0]
    output_dim = raw["wc"].shape[0]
    w1_l, b1_l, w2_l, b2_l = [], [], [], []
    for lp in raw["layers"]:
        w1, b1 = _fold_bn(lp["w1"], lp["bn1_gamma"], lp["bn1_beta"],
                          lp["bn1_mean"], lp["bn1_var"])
        w2, b2 = _fold_bn(lp["w2"], lp["bn2_gamma"], lp["bn2_beta"],
                          lp["bn2_mean"], lp["bn2_var"])
        in_dim = w1.shape[0]
        w1_l.append(jnp.pad(w1, ((0, d_pad - in_dim), (0, d_pad - hidden_dim))))
        w2_l.append(jnp.pad(w2, ((0, d_pad - hidden_dim), (0, d_pad - hidden_dim))))
        b1_l.append(jnp.pad(b1, (0, d_pad - hidden_dim))[None, :])
        b2_l.append(jnp.pad(b2, (0, d_pad - hidden_dim))[None, :])
    return {
        "w1": jnp.stack(w1_l).astype(jnp.bfloat16),      # (L, D, D)
        "b1": jnp.stack(b1_l).astype(jnp.float32),       # (L, 1, D)
        "w2": jnp.stack(w2_l).astype(jnp.bfloat16),      # (L, D, D)
        "b2": jnp.stack(b2_l).astype(jnp.float32),       # (L, 1, D)
        "wc": jnp.pad(raw["wc"].T,
                      ((0, d_pad - hidden_dim), (0, c_pad - output_dim))
                      ).astype(jnp.bfloat16),            # (D, C)
        "bc": jnp.pad(raw["bc"], (0, c_pad - output_dim))[None, :]
                 .astype(jnp.float32),                   # (1, C)
    }


# ----------------------------------------------------------------------------
# VMEM budgeting (per TPU generation)
# ----------------------------------------------------------------------------
def _fused_vmem_bytes(n_pad, d_pad, c_pad, tm, tk):
    """Conservative VMEM working-set estimate for the fused kernel."""
    return (2 * tm * tk * 2                       # A tiles (double-buffered)
            + 2 * n_pad * d_pad * 2               # h0 input block
            + 2 * 2 * d_pad * d_pad * 2           # W1 + W2 (per-layer blocks)
            + 2 * 2 * d_pad * 4                   # b1 + b2
            + 2 * (d_pad * c_pad * 2 + c_pad * 4)  # Wc + bc
            + 2 * tm * c_pad * 4                  # output tiles
            + 2 * n_pad * d_pad * 2               # h carry scratch
            + tm * d_pad * 4)                     # aggregation accumulator


def _vmem_budget_bytes():
    """Scoped-VMEM budget with headroom for compiler-internal scratch."""
    try:
        phys = int(pltpu.get_tpu_info().vmem_capacity_bytes)
    except Exception:
        phys = 64 * 2 ** 20        # conservative default (v7x per-core VMEM)
    # ~75% of 128 MiB parts (v5e/v6e), ~62.5% of 64 MiB parts (v7x).
    frac = 0.75 if phys >= 96 * 2 ** 20 else 0.625
    return int(phys * frac)


# ----------------------------------------------------------------------------
# Wrapper
# ----------------------------------------------------------------------------
def gin_forward(adj, feats, raw_params):
    """Full GIN inference forward.  adj: (N, N) dense 0/1, feats: (N, Din)."""
    n = adj.shape[0]
    input_dim = feats.shape[1]
    num_layers = len(raw_params["layers"])
    hidden_dim = raw_params["layers"][0]["w1"].shape[0]
    output_dim = raw_params["wc"].shape[0]

    # Keep d_pad at 128: the kernel is HBM-bound on A, so widening only adds
    # bytes and flops.
    d_pad = _round_up(max(input_dim, hidden_dim), _LANE)
    c_pad = _round_up(output_dim, _LANE)

    vmem_budget = _vmem_budget_bytes()

    # VMEM-budget-based residency: keep A fully resident (single block, DMA'd
    # from HBM once for all layers) whenever the fused working set fits the
    # per-generation budget; otherwise tile the aggregation.
    n_res = _round_up(n, _LANE)
    if _fused_vmem_bytes(n_res, d_pad, c_pad, n_res, n_res) <= vmem_budget:
        n_pad = tm = tk = n_res
        a_resident = True
    else:
        tile = 1024 if vmem_budget >= 64 * 2 ** 20 else 512
        n_pad = _round_up(n, tile)
        tm = tk = tile
        a_resident = False
        if _fused_vmem_bytes(n_pad, d_pad, c_pad, tm, tk) > vmem_budget:
            # TODO(synk): fall back to per-layer pallas_calls or an HBM h-carry
            # with manual DMA once the N-scaling residents (h carry + h0)
            # outgrow this generation's VMEM.
            raise NotImplementedError(
                "graph too large for the fully fused single-kernel GIN on "
                "this TPU generation")

    # Fold the GIN self term into the adjacency once: A_hat = A + I (exact in bf16).
    a_hat = adj + jnp.eye(n, dtype=adj.dtype)
    a_hat = jnp.pad(a_hat, ((0, n_pad - n), (0, n_pad - n))).astype(jnp.bfloat16)
    # Note: padded rows of A_hat are all-zero, so padded rows of h accumulate
    # relu(bias) garbage but cannot leak into real rows (their A columns are 0).
    h0 = jnp.pad(feats, ((0, n_pad - n), (0, d_pad - input_dim))).astype(jnp.bfloat16)

    p = prepare_params(raw_params, d_pad, c_pad)

    grid = (num_layers, n_pad // tm, n_pad // tk)
    kernel = functools.partial(_gin_fused_kernel, n_pad=n_pad, tm=tm, tk=tk)

    # Advisory cost estimate for the XLA scheduler.
    flops = int(num_layers * (2 * n_pad * n_pad * d_pad + 4 * n_pad * d_pad * d_pad)
                + 2 * n_pad * d_pad * c_pad)
    a_reads = 1 if a_resident else num_layers
    bytes_accessed = int(a_reads * n_pad * n_pad * 2
                         + n_pad * d_pad * 2
                         + num_layers * (2 * d_pad * d_pad * 2 + 2 * d_pad * 4)
                         + d_pad * c_pad * 2 + c_pad * 4
                         + n_pad * c_pad * 4)

    out = pl.pallas_call(
        kernel,
        out_shape=jax.ShapeDtypeStruct((n_pad, c_pad), jnp.float32),
        grid_spec=pltpu.PrefetchScalarGridSpec(
            num_scalar_prefetch=0,
            grid=grid,
            in_specs=[
                pl.BlockSpec((tm, tk), lambda l, i, k: (i, k)),              # A + I
                pl.BlockSpec((n_pad, d_pad), lambda l, i, k: (0, 0)),        # h0
                pl.BlockSpec((1, d_pad, d_pad), lambda l, i, k: (l, 0, 0)),  # W1'
                pl.BlockSpec((1, 1, d_pad), lambda l, i, k: (l, 0, 0)),      # b1'
                pl.BlockSpec((1, d_pad, d_pad), lambda l, i, k: (l, 0, 0)),  # W2'
                pl.BlockSpec((1, 1, d_pad), lambda l, i, k: (l, 0, 0)),      # b2'
                pl.BlockSpec((d_pad, c_pad), lambda l, i, k: (0, 0)),        # Wc'
                pl.BlockSpec((1, c_pad), lambda l, i, k: (0, 0)),            # bc
            ],
            # In the tiled regime this block is also flushed (with stale data)
            # for l < last; the sequential layer-outermost grid guarantees the
            # final layer overwrites it.  In the resident regime (row_tiles=1)
            # it is flushed exactly once at grid end.
            out_specs=pl.BlockSpec((tm, c_pad), lambda l, i, k: (i, 0)),
            scratch_shapes=[
                pltpu.VMEM((2 * n_pad, d_pad), jnp.bfloat16),   # h carry (double buffer)
                pltpu.VMEM((tm, d_pad), jnp.float32),           # aggregation accumulator
            ],
        ),
        compiler_params=pltpu.CompilerParams(
            # The layer axis carries state and every row tile feeds all other
            # rows' aggregation next layer, so all axes must stay sequential.
            dimension_semantics=("arbitrary", "arbitrary", "arbitrary"),
            vmem_limit_bytes=vmem_budget,
        ),
        cost_estimate=pl.CostEstimate(flops=flops, transcendentals=0,
                                      bytes_accessed=bytes_accessed),
    )(a_hat, h0, p["w1"], p["b1"], p["w2"], p["b2"], p["wc"], p["bc"])

    return out[:n, :output_dim]


# ----------------------------------------------------------------------------
# Deterministic parameter init (PyTorch-native layout) + pure-JAX reference
# ----------------------------------------------------------------------------
def init_raw_params(key, input_dim, hidden_dim, output_dim, num_layers):
    def linear(k, fan_in, fan_out):
        bound = fan_in ** -0.5
        return jax.random.uniform(k, (fan_out, fan_in), jnp.float32, -bound, bound)

    def batchnorm(ks, dim):
        kg, kb, km, kv = ks
        return dict(gamma=1.0 + 0.1 * jax.random.normal(kg, (dim,), jnp.float32),
                    beta=0.1 * jax.random.normal(kb, (dim,), jnp.float32),
                    mean=0.1 * jax.random.normal(km, (dim,), jnp.float32),
                    var=1.0 + 0.5 * jax.random.uniform(kv, (dim,), jnp.float32))

    layers = []
    for layer in range(num_layers):
        in_dim = input_dim if layer == 0 else hidden_dim
        key, k1, k2, *kbn = jax.random.split(key, 11)
        bn1 = batchnorm(kbn[0:4], hidden_dim)
        bn2 = batchnorm(kbn[4:8], hidden_dim)
        layers.append(dict(
            w1=linear(k1, in_dim, hidden_dim),
            w2=linear(k2, hidden_dim, hidden_dim),
            bn1_gamma=bn1["gamma"], bn1_beta=bn1["beta"],
            bn1_mean=bn1["mean"], bn1_var=bn1["var"],
            bn2_gamma=bn2["gamma"], bn2_beta=bn2["beta"],
            bn2_mean=bn2["mean"], bn2_var=bn2["var"],
        ))
    key, kc, kb = jax.random.split(key, 3)
    bound = hidden_dim ** -0.5
    return dict(
        layers=layers,
        wc=jax.random.uniform(kc, (output_dim, hidden_dim), jnp.float32, -bound, bound),
        bc=jax.random.uniform(kb, (output_dim,), jnp.float32, -bound, bound),
    )


def gin_reference(adj, h, raw):
    """Pure-JAX f32 reference mirroring the PyTorch module (eval mode)."""
    for lp in raw["layers"]:
        agg = adj @ h + h
        z = agg @ lp["w1"].T
        z = ((z - lp["bn1_mean"]) * jax.lax.rsqrt(lp["bn1_var"] + BN_EPS)
             * lp["bn1_gamma"] + lp["bn1_beta"])
        z = jnp.maximum(z, 0.0)
        y = z @ lp["w2"].T
        y = ((y - lp["bn2_mean"]) * jax.lax.rsqrt(lp["bn2_var"] + BN_EPS)
             * lp["bn2_gamma"] + lp["bn2_beta"])
        h = jnp.maximum(y, 0.0)
    return h @ raw["wc"].T + raw["bc"]


# ----------------------------------------------------------------------------
if __name__ == "__main__":
    num_nodes = 16
    input_dim = 8
    hidden_dim = 32
    output_dim = 4
    num_layers = 5

    root = jax.random.PRNGKey(0)
    k_adj, k_feat, k_param = jax.random.split(root, 3)

    # Deterministic random graph: symmetric 0/1 adjacency, no self loops
    # (the GIN self term is folded into A + I inside gin_forward).
    a = (jax.random.uniform(k_adj, (num_nodes, num_nodes)) < 0.3).astype(jnp.float32)
    adj = jnp.maximum(a, a.T) * (1.0 - jnp.eye(num_nodes, dtype=jnp.float32))

    h0 = jax.random.normal(k_feat, (num_nodes, input_dim), jnp.float32)
    raw = init_raw_params(k_param, input_dim, hidden_dim, output_dim, num_layers)

    scores = gin_forward(adj, h0, raw)
    jax.block_until_ready(scores)

    assert scores.shape == (num_nodes, output_dim)
    assert scores.dtype == jnp.float32

    # Loose tolerance: adjacency is exact in bf16, weights/activations are bf16
    # with f32 accumulation, so only small rounding error is expected.
    ref = gin_reference(adj, h0, raw)
    err = float(jnp.max(jnp.abs(scores - ref)))
    scale = float(jnp.max(jnp.abs(ref)))
    assert err <= 3e-2 + 8e-2 * scale, f"max |err| {err} vs reference scale {scale}"

    print("KERNEL_OK")
</pallas_src>

<mosaic_0001>
module attributes {stable_mosaic.version = 11 : i64} {
  func.func @_gin_fused_kernel(%arg0: i32, %arg1: i32, %arg2: i32, %arg3: memref<128x128xbf16, #tpu.memory_space<vmem>>, %arg4: memref<128x128xbf16, #tpu.memory_space<vmem>>, %arg5: memref<1x128x128xbf16, #tpu.memory_space<vmem>>, %arg6: memref<1x1x128xf32, #tpu.memory_space<vmem>>, %arg7: memref<1x128x128xbf16, #tpu.memory_space<vmem>>, %arg8: memref<1x1x128xf32, #tpu.memory_space<vmem>>, %arg9: memref<128x128xbf16, #tpu.memory_space<vmem>>, %arg10: memref<1x128xf32, #tpu.memory_space<vmem>>, %arg11: memref<128x128xf32, #tpu.memory_space<vmem>>, %arg12: memref<256x128xbf16, #tpu.memory_space<vmem>>, %arg13: memref<128x128xf32, #tpu.memory_space<vmem>>) attributes {dimension_semantics = [#tpu.dimension_semantics<arbitrary>, #tpu.dimension_semantics<arbitrary>, #tpu.dimension_semantics<arbitrary>], iteration_bounds = array<i64: 5, 1, 1>, scalar_prefetch = 0 : i64, scratch_operands = 2 : i64, tpu.core_type = #tpu.core_type<tc>, window_params = [{transform_indices = @transform_0, window_bounds = array<i64: 128, 128>}, {pipeline_mode = #tpu.pipeline_mode<synchronous>, transform_indices = @transform_1, window_bounds = array<i64: 128, 128>}, {transform_indices = @transform_2, window_bounds = array<i64: 1, 128, 128>}, {transform_indices = @transform_3, window_bounds = array<i64: 1, 1, 128>}, {transform_indices = @transform_4, window_bounds = array<i64: 1, 128, 128>}, {transform_indices = @transform_5, window_bounds = array<i64: 1, 1, 128>}, {pipeline_mode = #tpu.pipeline_mode<synchronous>, transform_indices = @transform_6, window_bounds = array<i64: 128, 128>}, {pipeline_mode = #tpu.pipeline_mode<synchronous>, transform_indices = @transform_7, window_bounds = array<i64: 1, 128>}, {transform_indices = @transform_8, window_bounds = array<i64: 128, 128>}]} {
    %c2_i32 = arith.constant 2 : i32
    %c0_i32 = arith.constant 0 : i32
    %0 = arith.cmpi eq, %c2_i32, %c0_i32 : i32
    %c1_i32 = arith.constant 1 : i32
    %1 = arith.select %0, %c1_i32, %c2_i32 : i32
    %2 = arith.remsi %arg0, %1 : i32
    %c0_i32_0 = arith.constant 0 : i32
    %3 = arith.cmpi ne, %2, %c0_i32_0 : i32
    %c0_i32_1 = arith.constant 0 : i32
    %4 = arith.cmpi slt, %2, %c0_i32_1 : i32
    %c0_i32_2 = arith.constant 0 : i32
    %5 = arith.cmpi slt, %1, %c0_i32_2 : i32
    %6 = arith.xori %4, %5 : i1
    %7 = arith.andi %6, %3 : i1
    %8 = arith.addi %2, %1 : i32
    %9 = arith.select %7, %8, %2 : i32
    %c128_i32 = arith.constant 128 : i32
    %10 = arith.muli %9, %c128_i32 : i32
    %c128_i32_3 = arith.constant 128 : i32
    %11 = arith.subi %c128_i32_3, %10 : i32
    %c0_i32_4 = arith.constant 0 : i32
    %12 = arith.cmpi eq, %arg0, %c0_i32_4 : i32
    %13 = arith.extui %12 : i1 to i32
    %c0_i32_5 = arith.constant 0 : i32
    %14 = arith.cmpi ne, %13, %c0_i32_5 : i32
    scf.if %14 {
      %c128_i32_10 = arith.constant 128 : i32
      %21 = arith.muli %arg2, %c128_i32_10 : i32
      %22 = tpu.assume_multiple %21, 128 : i32
      %23 = arith.index_cast %22 : i32 to index
      %c0 = arith.constant 0 : index
      %24 = vector.load %arg4[%23, %c0] : memref<128x128xbf16, #tpu.memory_space<vmem>>, vector<128x128xbf16>
      %c0_11 = arith.constant 0 : index
      %c0_12 = arith.constant 0 : index
      %25 = vector.load %arg3[%c0_11, %c0_12] : memref<128x128xbf16, #tpu.memory_space<vmem>>, vector<128x128xbf16>
      %cst = arith.constant dense<0.000000e+00> : vector<128x128xf32>
      %26 = tpu.matmul %25, %24, %cst {dimension_numbers = #tpu.dot_dimension_numbers<[1], [0], [0], [1], [0, 0, 1, 1], [], []>} : vector<128x128xbf16>, vector<128x128xbf16>, vector<128x128xf32> -> vector<128x128xf32>
      %c0_i32_13 = arith.constant 0 : i32
      %27 = arith.cmpi eq, %arg2, %c0_i32_13 : i32
      %28 = arith.extui %27 : i1 to i32
      %c0_i32_14 = arith.constant 0 : i32
      %29 = arith.cmpi ne, %28, %c0_i32_14 : i32
      scf.if %29 {
        %c0_17 = arith.constant 0 : index
        %c0_18 = arith.constant 0 : index
        %33 = vector.load %arg13[%c0_17, %c0_18] : memref<128x128xf32, #tpu.memory_space<vmem>>, vector<128x128xf32>
        tpu.vector_store %arg13[%c0_17, %c0_18], %26 {strides = array<i32>} : memref<128x128xf32, #tpu.memory_space<vmem>>, vector<128x128xf32>,
      } else {
      }
      %c0_i32_15 = arith.constant 0 : i32
      %30 = arith.cmpi sgt, %arg2, %c0_i32_15 : i32
      %31 = arith.extui %30 : i1 to i32
      %c0_i32_16 = arith.constant 0 : i32
      %32 = arith.cmpi ne, %31, %c0_i32_16 : i32
      scf.if %32 {
        %c0_17 = arith.constant 0 : index
        %c0_18 = arith.constant 0 : index
        %33 = vector.load %arg13[%c0_17, %c0_18] : memref<128x128xf32, #tpu.memory_space<vmem>>, vector<128x128xf32>
        %34 = arith.addf %33, %26 : vector<128x128xf32>
        %c0_19 = arith.constant 0 : index
        %c0_20 = arith.constant 0 : index
        %35 = vector.load %arg13[%c0_19, %c0_20] : memref<128x128xf32, #tpu.memory_space<vmem>>, vector<128x128xf32>
        tpu.vector_store %arg13[%c0_19, %c0_20], %34 {strides = array<i32>} : memref<128x128xf32, #tpu.memory_space<vmem>>, vector<128x128xf32>,
      } else {
      }
    } else {
    }
    %c0_i32_6 = arith.constant 0 : i32
    %15 = arith.cmpi sgt, %arg0, %c0_i32_6 : i32
    %16 = arith.extui %15 : i1 to i32
    %c0_i32_7 = arith.constant 0 : i32
    %17 = arith.cmpi ne, %16, %c0_i32_7 : i32
    scf.if %17 {
      %c128_i32_10 = arith.constant 128 : i32
      %21 = arith.muli %arg2, %c128_i32_10 : i32
      %22 = arith.addi %10, %21 : i32
      %23 = tpu.assume_multiple %22, 128 : i32
      %24 = arith.index_cast %23 : i32 to index
      %c0 = arith.constant 0 : index
      %25 = vector.load %arg12[%24, %c0] : memref<256x128xbf16, #tpu.memory_space<vmem>>, vector<128x128xbf16>
      %c0_11 = arith.constant 0 : index
      %c0_12 = arith.constant 0 : index
      %26 = vector.load %arg3[%c0_11, %c0_12] : memref<128x128xbf16, #tpu.memory_space<vmem>>, vector<128x128xbf16>
      %cst = arith.constant dense<0.000000e+00> : vector<128x128xf32>
      %27 = tpu.matmul %26, %25, %cst {dimension_numbers = #tpu.dot_dimension_numbers<[1], [0], [0], [1], [0, 0, 1, 1], [], []>} : vector<128x128xbf16>, vector<128x128xbf16>, vector<128x128xf32> -> vector<128x128xf32>
      %c0_i32_13 = arith.constant 0 : i32
      %28 = arith.cmpi eq, %arg2, %c0_i32_13 : i32
      %29 = arith.extui %28 : i1 to i32
      %c0_i32_14 = arith.constant 0 : i32
      %30 = arith.cmpi ne, %29, %c0_i32_14 : i32
      scf.if %30 {
        %c0_17 = arith.constant 0 : index
        %c0_18 = arith.constant 0 : index
        %34 = vector.load %arg13[%c0_17, %c0_18] : memref<128x128xf32, #tpu.memory_space<vmem>>, vector<128x128xf32>
        tpu.vector_store %arg13[%c0_17, %c0_18], %27 {strides = array<i32>} : memref<128x128xf32, #tpu.memory_space<vmem>>, vector<128x128xf32>,
      } else {
      }
      %c0_i32_15 = arith.constant 0 : i32
      %31 = arith.cmpi sgt, %arg2, %c0_i32_15 : i32
      %32 = arith.extui %31 : i1 to i32
      %c0_i32_16 = arith.constant 0 : i32
      %33 = arith.cmpi ne, %32, %c0_i32_16 : i32
      scf.if %33 {
        %c0_17 = arith.constant 0 : index
        %c0_18 = arith.constant 0 : index
        %34 = vector.load %arg13[%c0_17, %c0_18] : memref<128x128xf32, #tpu.memory_space<vmem>>, vector<128x128xf32>
        %35 = arith.addf %34, %27 : vector<128x128xf32>
        %c0_19 = arith.constant 0 : index
        %c0_20 = arith.constant 0 : index
        %36 = vector.load %arg13[%c0_19, %c0_20] : memref<128x128xf32, #tpu.memory_space<vmem>>, vector<128x128xf32>
        tpu.vector_store %arg13[%c0_19, %c0_20], %35 {strides = array<i32>} : memref<128x128xf32, #tpu.memory_space<vmem>>, vector<128x128xf32>,
      } else {
      }
    } else {
    }
    %c0_i32_8 = arith.constant 0 : i32
    %18 = arith.cmpi eq, %arg2, %c0_i32_8 : i32
    %19 = arith.extui %18 : i1 to i32
    %c0_i32_9 = arith.constant 0 : i32
    %20 = arith.cmpi ne, %19, %c0_i32_9 : i32
    scf.if %20 {
      %c0 = arith.constant 0 : index
      %c0_10 = arith.constant 0 : index
      %21 = vector.load %arg13[%c0, %c0_10] : memref<128x128xf32, #tpu.memory_space<vmem>>, vector<128x128xf32>
      %22 = arith.truncf %21 : vector<128x128xf32> to vector<128x128xbf16>
      %c0_11 = arith.constant 0 : index
      %c0_12 = arith.constant 0 : index
      %c0_13 = arith.constant 0 : index
      %23 = vector.load %arg5[%c0_11, %c0_12, %c0_13] : memref<1x128x128xbf16, #tpu.memory_space<vmem>>, vector<1x128x128xbf16>
      %24 = vector.shape_cast %23 : vector<1x128x128xbf16> to vector<128x128xbf16>
      %cst = arith.constant dense<0.000000e+00> : vector<128x128xf32>
      %25 = tpu.matmul %22, %24, %cst {dimension_numbers = #tpu.dot_dimension_numbers<[1], [0], [0], [1], [0, 0, 1, 1], [], []>} : vector<128x128xbf16>, vector<128x128xbf16>, vector<128x128xf32> -> vector<128x128xf32>
      %c0_14 = arith.constant 0 : index
      %c0_15 = arith.constant 0 : index
      %c0_16 = arith.constant 0 : index
      %26 = vector.load %arg6[%c0_14, %c0_15, %c0_16] : memref<1x1x128xf32, #tpu.memory_space<vmem>>, vector<1x1x128xf32>
      %27 = vector.shape_cast %26 : vector<1x1x128xf32> to vector<1x128xf32>
      %28 = vector.broadcast %27 : vector<1x128xf32> to vector<128x128xf32>
      %29 = arith.addf %25, %28 : vector<128x128xf32>
      %cst_17 = arith.constant 0.000000e+00 : f32
      %30 = vector.broadcast %cst_17 : f32 to vector<128x128xf32>
      %31 = arith.maximumf %29, %30 : vector<128x128xf32>
      %32 = arith.truncf %31 : vector<128x128xf32> to vector<128x128xbf16>
      %c0_18 = arith.constant 0 : index
      %c0_19 = arith.constant 0 : index
      %c0_20 = arith.constant 0 : index
      %33 = vector.load %arg7[%c0_18, %c0_19, %c0_20] : memref<1x128x128xbf16, #tpu.memory_space<vmem>>, vector<1x128x128xbf16>
      %34 = vector.shape_cast %33 : vector<1x128x128xbf16> to vector<128x128xbf16>
      %cst_21 = arith.constant dense<0.000000e+00> : vector<128x128xf32>
      %35 = tpu.matmul %32, %34, %cst_21 {dimension_numbers = #tpu.dot_dimension_numbers<[1], [0], [0], [1], [0, 0, 1, 1], [], []>} : vector<128x128xbf16>, vector<128x128xbf16>, vector<128x128xf32> -> vector<128x128xf32>
      %c0_22 = arith.constant 0 : index
      %c0_23 = arith.constant 0 : index
      %c0_24 = arith.constant 0 : index
      %36 = vector.load %arg8[%c0_22, %c0_23, %c0_24] : memref<1x1x128xf32, #tpu.memory_space<vmem>>, vector<1x1x128xf32>
      %37 = vector.shape_cast %36 : vector<1x1x128xf32> to vector<1x128xf32>
      %38 = vector.broadcast %37 : vector<1x128xf32> to vector<128x128xf32>
      %39 = arith.addf %35, %38 : vector<128x128xf32>
      %cst_25 = arith.constant 0.000000e+00 : f32
      %40 = vector.broadcast %cst_25 : f32 to vector<128x128xf32>
      %41 = arith.maximumf %39, %40 : vector<128x128xf32>
      %c4_i32 = arith.constant 4 : i32
      %42 = arith.cmpi slt, %arg0, %c4_i32 : i32
      %43 = arith.extui %42 : i1 to i32
      %c0_i32_26 = arith.constant 0 : i32
      %44 = arith.cmpi ne, %43, %c0_i32_26 : i32
      scf.if %44 {
        %c128_i32_29 = arith.constant 128 : i32
        %48 = arith.muli %arg1, %c128_i32_29 : i32
        %49 = arith.addi %11, %48 : i32
        %50 = tpu.assume_multiple %49, 128 : i32
        %51 = arith.truncf %41 : vector<128x128xf32> to vector<128x128xbf16>
        %52 = arith.index_cast %50 : i32 to index
        %c0_30 = arith.constant 0 : index
        %53 = vector.load %arg12[%52, %c0_30] : memref<256x128xbf16, #tpu.memory_space<vmem>>, vector<128x128xbf16>
        tpu.vector_store %arg12[%52, %c0_30], %51 {strides = array<i32>} : memref<256x128xbf16, #tpu.memory_space<vmem>>, vector<128x128xbf16>,
      } else {
      }
      %c4_i32_27 = arith.constant 4 : i32
      %45 = arith.cmpi eq, %arg0, %c4_i32_27 : i32
      %46 = arith.extui %45 : i1 to i32
      %c0_i32_28 = arith.constant 0 : i32
      %47 = arith.cmpi ne, %46, %c0_i32_28 : i32
      scf.if %47 {
        %48 = arith.truncf %41 : vector<128x128xf32> to vector<128x128xbf16>
        %c0_29 = arith.constant 0 : index
        %c0_30 = arith.constant 0 : index
        %49 = vector.load %arg9[%c0_29, %c0_30] : memref<128x128xbf16, #tpu.memory_space<vmem>>, vector<128x128xbf16>
        %cst_31 = arith.constant dense<0.000000e+00> : vector<128x128xf32>
        %50 = tpu.matmul %48, %49, %cst_31 {dimension_numbers = #tpu.dot_dimension_numbers<[1], [0], [0], [1], [0, 0, 1, 1], [], []>} : vector<128x128xbf16>, vector<128x128xbf16>, vector<128x128xf32> -> vector<128x128xf32>
        %c0_32 = arith.constant 0 : index
        %c0_33 = arith.constant 0 : index
        %51 = vector.load %arg10[%c0_32, %c0_33] : memref<1x128xf32, #tpu.memory_space<vmem>>, vector<1x128xf32>
        %52 = vector.broadcast %51 : vector<1x128xf32> to vector<128x128xf32>
        %53 = arith.addf %50, %52 : vector<128x128xf32>
        %c0_34 = arith.constant 0 : index
        %c0_35 = arith.constant 0 : index
        %54 = vector.load %arg11[%c0_34, %c0_35] : memref<128x128xf32, #tpu.memory_space<vmem>>, vector<128x128xf32>
        tpu.vector_store %arg11[%c0_34, %c0_35], %53 {strides = array<i32>} : memref<128x128xf32, #tpu.memory_space<vmem>>, vector<128x128xf32>,
      } else {
      }
    } else {
    }
    return
  }
  func.func @transform_0(%arg0: i32, %arg1: i32, %arg2: i32) -> (i32, i32) {
    %c0_i32 = arith.constant 0 : i32
    return %arg1, %arg2 : i32, i32
  }
  func.func @transform_1(%arg0: i32, %arg1: i32, %arg2: i32) -> (i32, i32) {
    %c0_i32 = arith.constant 0 : i32
    %c0_i32_0 = arith.constant 0 : i32
    %c0_i32_1 = arith.constant 0 : i32
    return %c0_i32, %c0_i32_0 : i32, i32
  }
  func.func @transform_2(%arg0: i32, %arg1: i32, %arg2: i32) -> (i32, i32, i32) {
    %c0_i32 = arith.constant 0 : i32
    %c0_i32_0 = arith.constant 0 : i32
    %c0_i32_1 = arith.constant 0 : i32
    return %arg0, %c0_i32, %c0_i32_0 : i32, i32, i32
  }
  func.func @transform_3(%arg0: i32, %arg1: i32, %arg2: i32) -> (i32, i32, i32) {
    %c0_i32 = arith.constant 0 : i32
    %c0_i32_0 = arith.constant 0 : i32
    %c0_i32_1 = arith.constant 0 : i32
    return %arg0, %c0_i32, %c0_i32_0 : i32, i32, i32
  }
  func.func @transform_4(%arg0: i32, %arg1: i32, %arg2: i32) -> (i32, i32, i32) {
    %c0_i32 = arith.constant 0 : i32
    %c0_i32_0 = arith.constant 0 : i32
    %c0_i32_1 = arith.constant 0 : i32
    return %arg0, %c0_i32, %c0_i32_0 : i32, i32, i32
  }
  func.func @transform_5(%arg0: i32, %arg1: i32, %arg2: i32) -> (i32, i32, i32) {
    %c0_i32 = arith.constant 0 : i32
    %c0_i32_0 = arith.constant 0 : i32
    %c0_i32_1 = arith.constant 0 : i32
    return %arg0, %c0_i32, %c0_i32_0 : i32, i32, i32
  }
  func.func @transform_6(%arg0: i32, %arg1: i32, %arg2: i32) -> (i32, i32) {
    %c0_i32 = arith.constant 0 : i32
    %c0_i32_0 = arith.constant 0 : i32
    %c0_i32_1 = arith.constant 0 : i32
    return %c0_i32, %c0_i32_0 : i32, i32
  }
  func.func @transform_7(%arg0: i32, %arg1: i32, %arg2: i32) -> (i32, i32) {
    %c0_i32 = arith.constant 0 : i32
    %c0_i32_0 = arith.constant 0 : i32
    %c0_i32_1 = arith.constant 0 : i32
    return %c0_i32, %c0_i32_0 : i32, i32
  }
  func.func @transform_8(%arg0: i32, %arg1: i32, %arg2: i32) -> (i32, i32) {
    %c0_i32 = arith.constant 0 : i32
    %c0_i32_0 = arith.constant 0 : i32
    return %arg1, %c0_i32 : i32, i32
  }
}

</mosaic_0001>

<bundles_post_ra>
// kernel: tpu_custom_call.1
= control target key start
LH: loop header
LB: loop body
LE: loop exit
PB: predicated region body
PF: predicated region fallthrough
CT: control target
= control target key end

     0   :  { %s3096_s0 = inlined_call_operand.hbm [shape: bf16[128,128], index: 0, kind: input, shape index: {}]   ;;  %s3097_s1 = inlined_call_operand.hbm [shape: bf16[128,128], index: 1, kind: input, shape index: {}]   ;;  %s3098_s2 = inlined_call_operand.hbm [shape: bf16[5,128,128], index: 2, kind: input, shape index: {}]   ;;  %s3099_s3 = inlined_call_operand.vmem [shape: f32[5,1,128], index: 3, kind: input, shape index: {}]   ;;  %s3100_s4 = inlined_call_operand.hbm [shape: bf16[5,128,128], index: 4, kind: input, shape index: {}]   ;;  %s3101_s5 = inlined_call_operand.vmem [shape: f32[5,1,128], index: 5, kind: input, shape index: {}]   ;;  %s3102_s6 = inlined_call_operand.hbm [shape: bf16[128,128], index: 6, kind: input, shape index: {}]   ;;  %s3103_s7 = inlined_call_operand.vmem [shape: f32[1,128], index: 7, kind: input, shape index: {}]   ;;  %s3104_s8 = inlined_call_operand.hbm [shape: f32[128,128], index: 8, kind: output, shape index: {}]  }
   0x1   :  { %3121 = sst [smem:[#allocation21_spill]] %s3096_s0 }
   0x2   :  { %3122 = sst [smem:[#allocation22_spill]] %s3097_s1 }
   0x3   :  { %3123 = sst [smem:[#allocation23_spill]] %s3098_s2 }
   0x4   :  { %3124 = sst [smem:[#allocation24_spill]] %s3099_s3 }
   0x5   :  { %3125 = sst [smem:[#allocation25_spill]] %s3101_s5 }
   0x6   :  { %3126 = sst [smem:[#allocation26_spill]] %s3103_s7 }
   0x7   :  { %3127 = sst [smem:[#allocation27_spill]] %s3104_s8 }
   0x8   :  { %13 = vsyncpa [#allocation5], 0 }
   0x9   :  { %14 = vsyncpa [#allocation8], 0 }
   0xa   :  { %15 = vsyncpa [#allocation6], 0  ;;  %s2621_s27 = smov 0   ;;  %s2623_s28 = smov 0  }
   0xb   :  { %s2625_s29 = smov 0   ;;  %s2627_s30 = smov 0  }
   0xc   :  { %s2629_s9 = smov 0   ;;  %s2631_s10 = smov 0  }
   0xd LB: > { %3128 = sst [smem:[#allocation18_spill]] %s2556_s30  ;;  %s2650_s11 = sadd.s32 4294967295, %s2564_s10   ;;  %s2564_s10 = sphi %s2631_s10, %s21_s10   ;;  %s2560_s9 = sphi %s2629_s9, %s3173_s9   ;;  %s2556_s30 = sphi %s2627_s30, %s3172_s30   ;;  %s2552_s29 = sphi %s2625_s29, %s3171_s29   ;;  %s2548_s28 = sphi %s2623_s28, %s3170_s28   ;;  %s2544_s27 = sphi %s2621_s27, %s3169_s27  }
   0xe   : > { %3129 = sst [smem:[#allocation19_spill]] %s2564_s10  ;;  %p103_p0 = scmp.ne.s32.totalorder %s2552_s29, %s2548_s28 }
   0xf   : > { %p104_p1 = scmp.eq.s32.totalorder %s2564_s10, 0  ;;  %p109_p2 = scmp.ne.s32.totalorder %s2548_s28, %s2544_s27 }
  0x10   : > { %p3105_p3 = scmp.eq.s32.totalorder %s2650_s11, 0  ;;  %p1806_p5 = scmp.ge.s32.totalorder %s2564_s10, 1 }
  0x11   : > { %p105_p4 = por %p104_p1, %p103_p0  ;;  %p266_p7 = scmp.lt.s32.totalorder %s2564_s10, 6 }
  0x12   : > { %p2661_p6 = por %p3105_p3, %p109_p2  ;;  %s2566_s15 = smov [#allocation4]  }
  0x13   : > { %p2666_p8 = pnand %p1806_p5, %p266_p7  ;;  %s282_s16 = sshll.u32 %s2566_s15, 4  ;;  %s2670_s16 = int_to_ptr.vmem [resolvable:$true] %s282_s16 }
  0x14   : > { %s3130_s13 = scalar_select %p2661_p6, 1, 0 }
  0x15   : > { %s3131_s14 = scalar_select %p2666_p8, 1, 0 }
  0x16   : > { %p2198_p9 = pneg %p2666_p8  ;;  %p2218_p10 = scmp.lt.s32.totalorder %s2564_s10, 5 }
  0x17   : > { %s2567_s19 = smov [#allocation7]   ;;  %s3134_s0 = sld [smem:[#allocation21_spill]] }
  0x18   : > { %p2677_p11 = pnand %p2198_p9, %p3105_p3  ;;  %p2681_p12 = pnand %p2218_p10, %p105_p4 }
  0x19   : > { %s295_s20 = sshll.u32 %s2567_s19, 4  ;;  %s2685_s20 = int_to_ptr.vmem [resolvable:$true] %s295_s20 }
  0x1a   : > { %s3132_s17 = scalar_select %p2677_p11, 1, 0 }
  0x1b   : > { %p2695_p0 = pneg %p2677_p11 }
  0x1d   : > { %s2328_s23 = scalar_lea.hbm %s3134_s0, 1024 }
  0x1e   : > { %p2329_p13 = scmp.ne.s32.totalorder %s3134_s0, %s2328_s23  ;;  %p2335_p4 = scmp.lt.u32.totalorder %s2328_s23, %s3134_s0 }
  0x1f   : > { %s3135_s26 = scalar_select %p2695_p0, 1, 0 }
  0x20   : > { %p2331_p1 = pnand %p2695_p0, %p2329_p13 }
  0x22   : > { %p2332_p2 = pneg %p2331_p1 }
  0x24   : > { %p2337_p5 = pnand %p2335_p4, %p2332_p2 }
  0x26   : > { %2340 = shalt.err (!%p2337_p5)
}
  0x27   : > { %s2341_s19 = scalar_lea.vmem %s2670_s16, 1024  ;;  %p2349_p3 = scmp.lt.s32.totalorder %s2670_s16, %s2670_s16 }
  0x28   : > { %p2342_p7 = scmp.ne.s32.totalorder %s2670_s16, %s2341_s19  ;;  %p2350_p6 = scmp.lt.s32.totalorder %s2341_s19, %s2341_s19 }
  0x2a   : > { %p2344_p9 = pnand %p2342_p7, %p2695_p0  ;;  %p2351_p13 = por %p2350_p6, %p2349_p3 }
  0x2c   : > { %p2345_p10 = pneg %p2344_p9 }
  0x2e   : > { %p2352_p1 = pnand %p2351_p13, %p2345_p10 }
  0x30   : > { %2355 = shalt.err (!%p2352_p1)
}
  0x31   : > { %s3108_s21 = smov 64   ;;  %s3110_s22 = smov 4  }
  0x32   : > { %2201 = dma.hbm_to_vmem [thread:$0]  (!%p2677_p11), %s3134_s0, 1024, %s2670_s16, [#allocation5], %s3108_s21, %s3108_s21, %s3110_s22  }
  0x33   : > { %s3136_s1 = sld [smem:[#allocation22_spill]] }
  0x39   : > { %s2356_s15 = scalar_lea.hbm %s3136_s1, 1024 }
  0x3a   : > { %p2357_p3 = scmp.ne.s32.totalorder %s3136_s1, %s2356_s15  ;;  %p2363_p4 = scmp.lt.u32.totalorder %s2356_s15, %s3136_s1 }
  0x3c   : > { %p2359_p6 = pnand %p2357_p3, %p2695_p0 }
  0x3e   : > { %p2360_p2 = pneg %p2359_p6 }
  0x40   : > { %p2365_p5 = pnand %p2363_p4, %p2360_p2 }
  0x42   : > { %2368 = shalt.err (!%p2365_p5)
}
  0x43   : > { %s2369_s16 = scalar_lea.vmem %s2685_s20, 1024  ;;  %p2377_p13 = scmp.lt.s32.totalorder %s2685_s20, %s2685_s20 }
  0x44   : > { %p2370_p7 = scmp.ne.s32.totalorder %s2685_s20, %s2369_s16  ;;  %p2378_p1 = scmp.lt.s32.totalorder %s2369_s16, %s2369_s16 }
  0x46   : > { %p2372_p9 = pnand %p2370_p7, %p2695_p0  ;;  %p2379_p3 = por %p2378_p1, %p2377_p13 }
  0x48   : > { %p2373_p10 = pneg %p2372_p9 }
  0x4a   : > { %p2380_p6 = pnand %p2379_p3, %p2373_p10 }
  0x4c   : > { %2383 = shalt.err (!%p2380_p6)
}
  0x4d   : > { %2204 = dma.hbm_to_vmem [thread:$0]  (!%p2677_p11), %s3136_s1, 1024, %s2685_s20, [#allocation8], %s3108_s21, %s3108_s21, %s3110_s22  }
  0x4e   : > { %s325_s12 = sand.u32 1, %s2564_s10   ;;  %s40_s23 = sadd.s32 1, %s2560_s9 }
  0x4f   : > { %p42_p2 = scmp.ge.s32.totalorder %s40_s23, 5  ;;  %s327_s24 = sand.u32 1, %s2552_s29  }
  0x50   : > { %s2748_s25 = sshll.u32 %s327_s24, 6  ;;  %s3112_s27 = sshll.u32 %s2560_s9, 10 }
  0x51   : > { %s3175_s23 = smov (%p42_p2, %s40_s23), 0  ;;  %s3138_s2 = sld [smem:[#allocation23_spill]] }
  0x52   : > { %3137 = sst [smem:[#allocation20_spill]] %s3175_s23  ;;  %s93_s20 = ssub.s32 %s2560_s9, %s3175_s23 }
  0x53   : > { %s329_s7 = scalar_lea.vmem [#allocation9], %s2748_s25  ;;  %p2763_p4 = scmp.eq.s32.totalorder %s93_s20, 0 }
  0x54   : > { %s336_s8 = sshll.u32 %s329_s7, 4  ;;  %s2769_s21 = scalar_lea.sflag [#allocation5], %s325_s12  ;;  %s2767_s8 = int_to_ptr.vmem [resolvable:$true] %s336_s8 }
  0x55   : > { %p3120_p7 = pneg %p2681_p12 }
  0x57   : > { %s2758_s16 = scalar_lea.hbm %s3138_s2, %s3112_s27  ;;  %s2389_s7 = scalar_lea.hbm %s3138_s2, 5120 }
  0x58   : > { %s2384_s22 = scalar_lea.hbm %s2758_s16, 1024  ;;  %p2390_p13 = scmp.lt.u32.totalorder %s2758_s16, %s3138_s2 }
  0x59   : > { %p2385_p5 = scmp.ne.s32.totalorder %s2758_s16, %s2384_s22  ;;  %p2391_p1 = scmp.lt.u32.totalorder %s2389_s7, %s2384_s22 }
  0x5a   : > { %p2393_p6 = scmp.lt.u32.totalorder %s2384_s22, %s2758_s16 }
  0x5b   : > { %p2387_p9 = pnand %p3120_p7, %p2385_p5  ;;  %p2392_p3 = por %p2391_p1, %p2390_p13 }
  0x5d   : > { %p2388_p10 = pneg %p2387_p9  ;;  %p2394_p2 = por %p2393_p6, %p2392_p3 }
  0x5f   : > { %p2395_p8 = pnand %p2394_p2, %p2388_p10 }
  0x61   : > { %2398 = shalt.err (!%p2395_p8)
}
  0x62   : > { %s2399_s12 = scalar_lea.vmem %s2767_s8, 1024  ;;  %s2570_s15 = smov [#allocation9]  }
  0x63   : > { %p2400_p5 = scmp.ne.s32.totalorder %s2767_s8, %s2399_s12  ;;  %s2404_s19 = sshll.u32 %s2570_s15, 4  ;;  %s2405_s19 = int_to_ptr.vmem [resolvable:$false] %s2404_s19 }
  0x64   : > { %s2406_s27 = scalar_lea.vmem %s2405_s19, 2048  ;;  %p2407_p0 = scmp.lt.s32.totalorder %s2767_s8, %s2405_s19 }
  0x65   : > { %p2402_p9 = pnand %p2400_p5, %p3120_p7  ;;  %p2408_p13 = scmp.lt.s32.totalorder %s2406_s27, %s2399_s12 }
  0x67   : > { %p2403_p11 = pneg %p2402_p9  ;;  %p2409_p1 = por %p2408_p13, %p2407_p0 }
  0x69   : > { %p2410_p3 = pnand %p2409_p1, %p2403_p11 }
  0x6b   : > { %2413 = shalt.err (!%p2410_p3)
}
  0x6c   : > { %s3140_s22 = smov 4   ;;  %s3141_s7 = smov 64  }
  0x6d   : > { %2211 = dma.hbm_to_vmem [thread:$0]  (!%p2681_p12), %s2758_s16, 1024, %s2767_s8, %s2769_s21, %s3141_s7, %s3141_s7, %s3140_s22  }
  0x6e   : > { %s3142_s20 = sadd.s32 1, %s2552_s29  ;;  %s2571_s15 = smov [#allocation11]  }
  0x6f   : > { %s2805_s12 = scalar_select %p2763_p4, %s2552_s29, %s3142_s20  }
  0x70   : > { %s308_s19 = sshll.u32 %s2571_s15, 4  ;;  %s3143_s27 = sshll.u32 %s2560_s9, 10  ;;  %s309_s19 = int_to_ptr.vmem [resolvable:$true] %s308_s19 }
  0x71   : > { %s2812_s2 = scalar_lea.hbm %s3100_s4, %s3143_s27  ;;  %s356_s23 = scalar_lea.vmem [#allocation10], %s2748_s25 }
  0x72   : > { %s363_s10 = sshll.u32 %s356_s23, 4  ;;  %s2414_s30 = scalar_lea.hbm %s3102_s6, 1024  ;;  %s2836_s10 = int_to_ptr.vmem [resolvable:$true] %s363_s10 }
  0x73   : > { %p2415_p8 = scmp.ne.s32.totalorder %s3102_s6, %s2414_s30  ;;  %p3144_p11 = scmp.ne.s32.totalorder %s3135_s26, 0 }
  0x74   : > { %p2421_p10 = scmp.lt.u32.totalorder %s2414_s30, %s3102_s6 }
  0x75   : > { %p2417_p0 = pnand %p2415_p8, %p3144_p11 }
  0x77   : > { %p2418_p4 = pneg %p2417_p0 }
  0x79   : > { %p2423_p6 = pnand %p2421_p10, %p2418_p4 }
  0x7b   : > { %2426 = shalt.err (!%p2423_p6)
}
  0x7c   : > { %s2427_s0 = scalar_lea.vmem %s309_s19, 1024  ;;  %p2435_p13 = scmp.lt.s32.totalorder %s309_s19, %s309_s19 }
  0x7d   : > { %p2428_p2 = scmp.ne.s32.totalorder %s309_s19, %s2427_s0  ;;  %p2436_p1 = scmp.lt.s32.totalorder %s2427_s0, %s2427_s0 }
  0x7f   : > { %p2430_p5 = pnand %p2428_p2, %p3144_p11  ;;  %p2437_p3 = por %p2436_p1, %p2435_p13 }
  0x81   : > { %p2431_p9 = pneg %p2430_p5 }
  0x83   : > { %p2438_p7 = pnand %p2437_p3, %p2431_p9 }
  0x85   : > { %2441 = shalt.err (!%p2438_p7)
}
  0x86   : > { %p3145_p8 = scmp.ne.s32.totalorder %s3132_s17, 0  ;;  %s2442_s5 = scalar_lea.hbm %s2812_s2, 1024 }
  0x87   : > { %p2443_p11 = scmp.ne.s32.totalorder %s2812_s2, %s2442_s5  ;;  %p3146_p7 = pneg %p2681_p12 }
  0x88   : > { %2207 = dma.hbm_to_vmem [thread:$0]  (!%p3145_p8), %s3102_s6, 1024, %s309_s19, [#allocation8], %s3141_s7, %s3141_s7, %s3140_s22  }
  0x89   : > { %p2445_p0 = pnand %p2443_p11, %p3146_p7  ;;  %s2447_s26 = scalar_lea.hbm %s3100_s4, 5120 }
  0x8a   : > { %p2448_p10 = scmp.lt.u32.totalorder %s2812_s2, %s3100_s4  ;;  %p2449_p6 = scmp.lt.u32.totalorder %s2447_s26, %s2442_s5 }
  0x8b   : > { %p2446_p4 = pneg %p2445_p0  ;;  %p2451_p5 = scmp.lt.u32.totalorder %s2442_s5, %s2812_s2 }
  0x8c   : > { %p2450_p2 = por %p2449_p6, %p2448_p10 }
  0x8e   : > { %p2452_p9 = por %p2451_p5, %p2450_p2 }
  0x90   : > { %p2453_p13 = pnand %p2452_p9, %p2446_p4 }
  0x92   : > { %2456 = shalt.err (!%p2453_p13)
}
  0x93   : > { %s2457_s15 = scalar_lea.vmem %s2836_s10, 1024  ;;  %p3147_p3 = pmov %p3146_p7 }
  0x94   : > { %p2458_p1 = scmp.ne.s32.totalorder %s2836_s10, %s2457_s15  ;;  %s2572_s19 = smov [#allocation10]  }
  0x95   : > { %s2462_s27 = sshll.u32 %s2572_s19, 4  ;;  %s2463_s27 = int_to_ptr.vmem [resolvable:$false] %s2462_s27 }
  0x96   : > { %p2460_p8 = pnand %p2458_p1, %p3147_p3  ;;  %s2464_s16 = scalar_lea.vmem %s2463_s27, 2048 }
  0x97   : > { %p2465_p7 = scmp.lt.s32.totalorder %s2836_s10, %s2463_s27  ;;  %p2466_p0 = scmp.lt.s32.totalorder %s2464_s16, %s2457_s15 }
  0x98   : > { %p2461_p11 = pneg %p2460_p8 }
  0x99   : > { %p2467_p10 = por %p2466_p0, %p2465_p7 }
  0x9b   : > { %p2468_p6 = pnand %p2467_p10, %p2461_p11 }
  0x9d   : > { %2471 = shalt.err (!%p2468_p6)
}
  0x9e   : > { %2214 = dma.hbm_to_vmem [thread:$0]  (!%p2681_p12), %s2812_s2, 1024, %s2836_s10, %s2769_s21, %s3141_s7, %s3141_s7, %s3140_s22  }
  0x9f   : > { %p3148_p4 = scmp.ne.s32.totalorder %s3131_s14, 0 }
  0xa0   : > { %p3149_p2 = scmp.eq.s32.totalorder (!%p3148_p4), %s2650_s11, 0 }
  0xa1   : > { %381 = sbr.rel (%p3148_p4) target bundleno = 1513 (0x5e9), region = 52 }
  0xa8   : > { %2523 = dma.done.wait (%p3149_p2), [#allocation5], 1024   ;;  %p3150_p5 = pmov %p3149_p2 }
  0xa9   : > { %p3151_p9 = pmov %p3149_p2 }
  0xaa   : > { %2525 = vsyncadd (%p3150_p5), [#allocation5], 4294966272 }
  0xab   : > { %2527 = dma.done.wait (%p3151_p9), [#allocation8], 1024   ;;  %p3152_p13 = pmov %p3149_p2 }
  0xac   : > { %s391_s18 = sand.u32 1, %s2650_s11   ;;  %s393_s2 = sand.u32 1, %s2548_s28  }
  0xad   : > { %2529 = vsyncadd (%p3152_p13), [#allocation8], 4294966272  ;;  %s1820_s10 = sshll.u32 %s393_s2, 6  ;;  %s392_s14 = scalar_lea.sflag [#allocation5], %s391_s18 }
  0xae   : > { %s2877_s21 = scalar_lea.vmem [#allocation9], %s1820_s10  ;;  %p3153_p12 = scmp.ne.s32.totalorder %s3130_s13, 0 }
  0xb0   : > { %2531 = dma.done.wait (%p3153_p12), %s392_s14, 2048  }
  0xb1   : > { %2533 = vsyncadd (%p3153_p12), %s392_s14, 4294965248  ;;  %s2883_s22 = scalar_lea.vmem [#allocation10], %s1820_s10  ;;  %p3154_p1 = pmov %p3149_p2 }
  0xb3   : > { %2535 = dma.done.wait (%p3154_p1), [#allocation8], 1024   ;;  %p3155_p3 = pmov %p3154_p1 }
  0xb4   : > { %s3156_s7 = sld [smem:[#allocation18_spill]]  ;;  %s3157_s1 = sld [smem:[#allocation24_spill]] }
  0xb5   : > { %2537 = vsyncadd (%p3155_p3), [#allocation8], 4294966272  ;;  %s3158_s17 = sld [smem:[#allocation25_spill]] }
  0xba   : > { %p448_p8 = scmp.lt.s32.totalorder %s3156_s7, 4  ;;  %s457_s8 = ssub.s32 0, %s3156_s7 }
  0xbb   : > { %p456_p11 = scmp.lt.s32.totalorder %s3156_s7, 0  ;;  %s1823_s13 = smin.u32 %s3156_s7, %s457_s8 }
  0xbc   : > { %s2892_s24 = scalar_select %p448_p8, %s3156_s7, 4 }
  0xbd   : > { %s459_s23 = sand.u32 1, %s1823_s13   ;;  %p1827_p0 = scmp.ne.s32.totalorder %s3156_s7, 0 }
  0xbe   : > { %s450_s3 = scalar_lea.vmem %s3157_s1, %s2892_s24  ;;  %s453_s26 = scalar_lea.vmem %s3158_s17, %s2892_s24  ;;  %v2280_v0 = vld [vmem:[#allocation7] sm:$0xff] (!%p1827_p0)   ;;  %v2281_v1 = vld [vmem:[#allocation7 + $0x8] sm:$0xff] (!%p1827_p0)   ;;  %v2282_v2 = vld [vmem:[#allocation7 + $0x10] sm:$0xff] (!%p1827_p0)  }
  0xbf   : > { %s460_s25 = ssub.s32 0, %s459_s23  ;;  %473 = sbr.rel (%p1827_p0) target bundleno = 447 (0x1bf), region = 76  ;;  %1970 = vmatprep.subr.bf16.mxu0 (!%p1827_p0), %v2280_v0  ;;  %2130 = vmatprep.subr.bf16.mxu1 (!%p1827_p0), %v2280_v0  ;;  %v2283_v3 = vld [vmem:[#allocation7 + $0x18] sm:$0xff] (!%p1827_p0)   ;;  %v2288_v4 = vld [vmem:[#allocation4] sm:$0xff] (!%p1827_p0)   ;;  %v2285_v7 = vld [vmem:[#allocation7 + $0x28] sm:$0xff] (!%p1827_p0)  }
  0xc0   : > { %s3177_s25 = smov (!%p456_p11, %s460_s25), %s459_s23  ;;  %1971 = vmatpush3.bf16.msra.mxu0 (!%p1827_p0), %v2280_v0  ;;  %2138 = vmatpush3.bf16.msra.mxu1 (!%p1827_p0), %v2280_v0  ;;  %v2289_v5 = vld [vmem:[#allocation4 + $0x20] sm:$0xff] (!%p1827_p0)   ;;  %v2286_v8 = vld [vmem:[#allocation7 + $0x30] sm:$0xff] (!%p1827_p0)   ;;  %v2287_v9 = vld [vmem:[#allocation7 + $0x38] sm:$0xff] (!%p1827_p0)  }
  0xc1   : > { %p1825_p7 = scmp.lt.s32.totalorder %s3177_s25, 0  ;;  %s466_s15 = sadd.s32 2, %s3177_s25  ;;  %1972 = vmatprep.subr.bf16.mxu0 (!%p1827_p0), %v2281_v1  ;;  %2131 = vmatprep.subr.bf16.mxu1 (!%p1827_p0), %v2281_v1  ;;  %v2284_v6 = vld [vmem:[#allocation7 + $0x20] sm:$0xff] (!%p1827_p0)   ;;  %v2290_v10 = vld [vmem:[#allocation4 + $0x8] sm:$0xff] (!%p1827_p0)   ;;  %v2292_v12 = vld [vmem:[#allocation4 + $0x10] sm:$0xff] (!%p1827_p0)  }
  0xc2   : > { %1986 = vmatprep.mubr.bf16.mxu0 (!%p1827_p0), %v2288_v4  ;;  %1994 = vmatprep.mubr.bf16.mxu1 (!%p1827_p0), %v2289_v5  ;;  %v2291_v11 = vld [vmem:[#allocation4 + $0x28] sm:$0xff] (!%p1827_p0)   ;;  %v2293_v13 = vld [vmem:[#allocation4 + $0x30] sm:$0xff] (!%p1827_p0)   ;;  %v2294_v14 = vld [vmem:[#allocation4 + $0x18] sm:$0xff] (!%p1827_p0)  }
  0xc3   : > { %s3179_s15 = smov (!%p1825_p7, %s466_s15), %s3177_s25  ;;  %v2295_v15 = vld [vmem:[#allocation4 + $0x38] sm:$0xff] (!%p1827_p0)  }
  0xc4   : > { %s1826_s19 = sshll.u32 %s3179_s15, 7  ;;  %1973 = vmatpush3.bf16.msra.mxu0 (!%p1827_p0), %v2281_v1  ;;  %2139 = vmatpush3.bf16.msra.mxu1 (!%p1827_p0), %v2281_v1 }
  0xc5   : > { %s2909_s27 = ssub.s32 128, %s1826_s19  ;;  %1974 = vmatprep.subr.bf16.mxu0 (!%p1827_p0), %v2282_v2  ;;  %2132 = vmatprep.subr.bf16.mxu1 (!%p1827_p0), %v2282_v2 }
  0xc8   : > { %1975 = vmatpush3.bf16.msra.mxu0 %v2282_v2  ;;  %2140 = vmatpush3.bf16.msra.mxu1 %v2282_v2 }
  0xc9   : > { %1976 = vmatprep.subr.bf16.mxu0 %v2283_v3  ;;  %2133 = vmatprep.subr.bf16.mxu1 %v2283_v3 }
  0xcc   : > { %1977 = vmatpush3.bf16.msra.mxu0 %v2283_v3  ;;  %2141 = vmatpush3.bf16.msra.mxu1 %v2283_v3 }
  0xcd   : > { %1978 = vmatprep.subr.bf16.mxu0 %v2284_v6  ;;  %2134 = vmatprep.subr.bf16.mxu1 %v2284_v6 }
  0xd0   : > { %1979 = vmatpush3.bf16.msra.mxu0 %v2284_v6  ;;  %2142 = vmatpush3.bf16.msra.mxu1 %v2284_v6 }
  0xd1   : > { %1980 = vmatprep.subr.bf16.mxu0 %v2285_v7  ;;  %2135 = vmatprep.subr.bf16.mxu1 %v2285_v7 }
  0xd4   : > { %1981 = vmatpush3.bf16.msra.mxu0 %v2285_v7  ;;  %2143 = vmatpush3.bf16.msra.mxu1 %v2285_v7 }
  0xd5   : > { %1982 = vmatprep.subr.bf16.mxu0 %v2286_v8  ;;  %2136 = vmatprep.subr.bf16.mxu1 %v2286_v8 }
  0xd8   : > { %1983 = vmatpush3.bf16.msra.mxu0 %v2286_v8  ;;  %2144 = vmatpush3.bf16.msra.mxu1 %v2286_v8 }
  0xd9   : > { %1984 = vmatprep.subr.bf16.mxu0 %v2287_v9  ;;  %2137 = vmatprep.subr.bf16.mxu1 %v2287_v9 }
  0xdc   : > { %1985 = vmatpush3.bf16.msra.mxu0 %v2287_v9  ;;  %2145 = vmatpush3.bf16.msra.mxu1 %v2287_v9 }
  0xdf   : > { %1987 = vmatmul.mubr.bf16.vlgmr.msra.gmra.mrb[0].mxu0 %v2290_v10  ;;  %1995 = vmatmul.mubr.bf16.vlgmr.msra.gmra.mrb[0].mxu1 %v2291_v11 }
  0xe0   : > { %1990 = vmatprep.mubr.bf16.mxu0 %v2292_v12  ;;  %1998 = vmatprep.mubr.bf16.mxu1 %v2293_v13 }
  0xe7   : > { %1991 = vmatmul.mubr.bf16.gmra.mrb[4].mxu0 %v2294_v14  ;;  %1999 = vmatmul.mubr.bf16.gmra.mrb[4].mxu1 %v2295_v15 }
 0x1b2   : > { %v1988_v16 = vpop.f32.mrb[0].mxu0  ;;  %v1996_v17 = vpop.f32.mrb[0].mxu1 }
 0x1b3   : > { %710 = vst [vmem:[#allocation3 + $0x10] sm:$0xff] %v1988_v16  ;;  %718 = vst [vmem:[#allocation3 + $0x50] sm:$0xff] %v1996_v17  ;;  %v641_v18 = vpop.f32.mrb[1].mxu0  ;;  %v673_v19 = vpop.f32.mrb[1].mxu1 }
 0x1b4   : > { %708 = vst [vmem:[#allocation3] sm:$0xff] %v641_v18  ;;  %716 = vst [vmem:[#allocation3 + $0x40] sm:$0xff] %v673_v19  ;;  %v1989_v20 = vpop.f32.mrb[2].mxu0  ;;  %v1997_v21 = vpop.f32.mrb[2].mxu1 }
 0x1b5   : > { %711 = vst [vmem:[#allocation3 + $0x18] sm:$0xff] %v1989_v20  ;;  %719 = vst [vmem:[#allocation3 + $0x58] sm:$0xff] %v1997_v21  ;;  %v644_v22 = vpop.f32.mrb[3].mxu0  ;;  %v676_v23 = vpop.f32.mrb[3].mxu1 }
 0x1b6   : > { %709 = vst [vmem:[#allocation3 + $0x8] sm:$0xff] %v644_v22  ;;  %717 = vst [vmem:[#allocation3 + $0x48] sm:$0xff] %v676_v23 }
 0x1ba   : > { %v1992_v24 = vpop.f32.mrb[4].mxu0  ;;  %v2000_v25 = vpop.f32.mrb[4].mxu1 }
 0x1bb   : > { %714 = vst [vmem:[#allocation3 + $0x30] sm:$0xff] %v1992_v24  ;;  %722 = vst [vmem:[#allocation3 + $0x70] sm:$0xff] %v2000_v25  ;;  %v657_v26 = vpop.f32.mrb[5].mxu0  ;;  %v689_v27 = vpop.f32.mrb[5].mxu1 }
 0x1bc   : > { %712 = vst [vmem:[#allocation3 + $0x20] sm:$0xff] %v657_v26  ;;  %720 = vst [vmem:[#allocation3 + $0x60] sm:$0xff] %v689_v27  ;;  %v1993_v28 = vpop.f32.mrb[6].mxu0  ;;  %v2001_v29 = vpop.f32.mrb[6].mxu1 }
 0x1bd   : > { %715 = vst [vmem:[#allocation3 + $0x38] sm:$0xff] %v1993_v28  ;;  %723 = vst [vmem:[#allocation3 + $0x78] sm:$0xff] %v2001_v29  ;;  %v660_v30 = vpop.f32.mrb[7].mxu0  ;;  %v692_v31 = vpop.f32.mrb[7].mxu1 }
 0x1be   : > { %713 = vst [vmem:[#allocation3 + $0x28] sm:$0xff] %v660_v30  ;;  %721 = vst [vmem:[#allocation3 + $0x68] sm:$0xff] %v692_v31 }
 0x1bf PF: > { %s3159_s16 = sld [smem:[#allocation18_spill]] }
 0x1c5   : > { %p1844_p10 = scmp.le.s32.totalorder %s3159_s16, 0 }
 0x1c6   : > { %s782_s18 = sshra.s32 (!%p1844_p10), %s1826_s19, 4  ;;  %v2296_v32 = vld [vmem:[#allocation4] sm:$0xff] (!%p1844_p10)   ;;  %v2298_v42 = vld [vmem:[#allocation4 + $0x8] sm:$0xff] (!%p1844_p10)   ;;  %v2300_v44 = vld [vmem:[#allocation4 + $0x10] sm:$0xff] (!%p1844_p10)  }
 0x1c7   : > { %779 = sbr.rel (%p1844_p10) target bundleno = 714 (0x2ca), region = 88  ;;  %s1845_s2 = sshll.u32 (!%p1844_p10), %s782_s18, 3  ;;  %v2297_v33 = vld [vmem:[#allocation4 + $0x20] sm:$0xff] (!%p1844_p10)   ;;  %2018 = vmatprep.mubr.bf16.mxu0 (!%p1844_p10), %v2296_v32  ;;  %v2299_v43 = vld [vmem:[#allocation4 + $0x28] sm:$0xff] (!%p1844_p10)   ;;  %v2301_v45 = vld [vmem:[#allocation4 + $0x30] sm:$0xff] (!%p1844_p10)  }
 0x1c8   : > { %s2915_s10 = scalar_lea.vmem (!%p1844_p10), [#allocation2], %s1845_s2  ;;  %2026 = vmatprep.mubr.bf16.mxu1 (!%p1844_p10), %v2297_v33  ;;  %v2302_v46 = vld [vmem:[#allocation4 + $0x18] sm:$0xff] (!%p1844_p10)  }
 0x1c9   : > { %v786_v34 = vld [vmem:[%s2915_s10] sm:$0xff] (!%p1844_p10)  ;;  %v787_v35 = vld [vmem:[%s2915_s10 + $0x8] sm:$0xff] (!%p1844_p10)  ;;  %v788_v36 = vld [vmem:[%s2915_s10 + $0x10] sm:$0xff] (!%p1844_p10) }
 0x1ca   : > { %2002 = vmatprep.subr.bf16.mxu0 (!%p1844_p10), %v786_v34  ;;  %2146 = vmatprep.subr.bf16.mxu1 (!%p1844_p10), %v786_v34  ;;  %v789_v37 = vld [vmem:[%s2915_s10 + $0x18] sm:$0xff] (!%p1844_p10)  ;;  %v790_v38 = vld [vmem:[%s2915_s10 + $0x20] sm:$0xff] (!%p1844_p10)  ;;  %v791_v39 = vld [vmem:[%s2915_s10 + $0x28] sm:$0xff] (!%p1844_p10) }
 0x1cb   : > { %2003 = vmatpush3.bf16.msra.mxu0 (!%p1844_p10), %v786_v34  ;;  %2154 = vmatpush3.bf16.msra.mxu1 (!%p1844_p10), %v786_v34  ;;  %v792_v40 = vld [vmem:[%s2915_s10 + $0x30] sm:$0xff] (!%p1844_p10)  ;;  %v793_v41 = vld [vmem:[%s2915_s10 + $0x38] sm:$0xff] (!%p1844_p10) }
 0x1cc   : > { %2004 = vmatprep.subr.bf16.mxu0 (!%p1844_p10), %v787_v35  ;;  %2147 = vmatprep.subr.bf16.mxu1 (!%p1844_p10), %v787_v35  ;;  %v2303_v47 = vld [vmem:[#allocation4 + $0x38] sm:$0xff] (!%p1844_p10)  }
 0x1cf   : > { %2005 = vmatpush3.bf16.msra.mxu0 %v787_v35  ;;  %2155 = vmatpush3.bf16.msra.mxu1 %v787_v35 }
 0x1d0   : > { %2006 = vmatprep.subr.bf16.mxu0 %v788_v36  ;;  %2148 = vmatprep.subr.bf16.mxu1 %v788_v36 }
 0x1d3   : > { %2007 = vmatpush3.bf16.msra.mxu0 %v788_v36  ;;  %2156 = vmatpush3.bf16.msra.mxu1 %v788_v36 }
 0x1d4   : > { %2008 = vmatprep.subr.bf16.mxu0 %v789_v37  ;;  %2149 = vmatprep.subr.bf16.mxu1 %v789_v37 }
 0x1d7   : > { %2009 = vmatpush3.bf16.msra.mxu0 %v789_v37  ;;  %2157 = vmatpush3.bf16.msra.mxu1 %v789_v37 }
 0x1d8   : > { %2010 = vmatprep.subr.bf16.mxu0 %v790_v38  ;;  %2150 = vmatprep.subr.bf16.mxu1 %v790_v38 }
 0x1db   : > { %2011 = vmatpush3.bf16.msra.mxu0 %v790_v38  ;;  %2158 = vmatpush3.bf16.msra.mxu1 %v790_v38 }
 0x1dc   : > { %2012 = vmatprep.subr.bf16.mxu0 %v791_v39  ;;  %2151 = vmatprep.subr.bf16.mxu1 %v791_v39 }
 0x1df   : > { %2013 = vmatpush3.bf16.msra.mxu0 %v791_v39  ;;  %2159 = vmatpush3.bf16.msra.mxu1 %v791_v39 }
 0x1e0   : > { %2014 = vmatprep.subr.bf16.mxu0 %v792_v40  ;;  %2152 = vmatprep.subr.bf16.mxu1 %v792_v40 }
 0x1e3   : > { %2015 = vmatpush3.bf16.msra.mxu0 %v792_v40  ;;  %2160 = vmatpush3.bf16.msra.mxu1 %v792_v40 }
 0x1e4   : > { %2016 = vmatprep.subr.bf16.mxu0 %v793_v41  ;;  %2153 = vmatprep.subr.bf16.mxu1 %v793_v41 }
 0x1e7   : > { %2017 = vmatpush3.bf16.msra.mxu0 %v793_v41  ;;  %2161 = vmatpush3.bf16.msra.mxu1 %v793_v41 }
 0x1ea   : > { %2019 = vmatmul.mubr.bf16.vlgmr.msra.gmra.mrb[0].mxu0 %v2298_v42  ;;  %2027 = vmatmul.mubr.bf16.vlgmr.msra.gmra.mrb[0].mxu1 %v2299_v43 }
 0x1eb   : > { %2022 = vmatprep.mubr.bf16.mxu0 %v2300_v44  ;;  %2030 = vmatprep.mubr.bf16.mxu1 %v2301_v45 }
 0x1f2   : > { %2023 = vmatmul.mubr.bf16.gmra.mrb[4].mxu0 %v2302_v46  ;;  %2031 = vmatmul.mubr.bf16.gmra.mrb[4].mxu1 %v2303_v47 }
 0x2bd   : > { %v2020_v48 = vpop.f32.mrb[0].mxu0  ;;  %v2028_v49 = vpop.f32.mrb[0].mxu1 }
 0x2be   : > { %961 = vst [vmem:[#allocation3 + $0x10] sm:$0xff] %v2020_v48  ;;  %969 = vst [vmem:[#allocation3 + $0x50] sm:$0xff] %v2028_v49  ;;  %v892_v50 = vpop.f32.mrb[1].mxu0  ;;  %v924_v51 = vpop.f32.mrb[1].mxu1 }
 0x2bf   : > { %959 = vst [vmem:[#allocation3] sm:$0xff] %v892_v50  ;;  %967 = vst [vmem:[#allocation3 + $0x40] sm:$0xff] %v924_v51  ;;  %v2021_v52 = vpop.f32.mrb[2].mxu0  ;;  %v2029_v53 = vpop.f32.mrb[2].mxu1 }
 0x2c0   : > { %962 = vst [vmem:[#allocation3 + $0x18] sm:$0xff] %v2021_v52  ;;  %970 = vst [vmem:[#allocation3 + $0x58] sm:$0xff] %v2029_v53  ;;  %v895_v54 = vpop.f32.mrb[3].mxu0  ;;  %v927_v55 = vpop.f32.mrb[3].mxu1 }
 0x2c1   : > { %960 = vst [vmem:[#allocation3 + $0x8] sm:$0xff] %v895_v54  ;;  %968 = vst [vmem:[#allocation3 + $0x48] sm:$0xff] %v927_v55 }
 0x2c5   : > { %v2024_v56 = vpop.f32.mrb[4].mxu0  ;;  %v2032_v57 = vpop.f32.mrb[4].mxu1 }
 0x2c6   : > { %965 = vst [vmem:[#allocation3 + $0x30] sm:$0xff] %v2024_v56  ;;  %973 = vst [vmem:[#allocation3 + $0x70] sm:$0xff] %v2032_v57  ;;  %v908_v58 = vpop.f32.mrb[5].mxu0  ;;  %v940_v59 = vpop.f32.mrb[5].mxu1 }
 0x2c7   : > { %963 = vst [vmem:[#allocation3 + $0x20] sm:$0xff] %v908_v58  ;;  %971 = vst [vmem:[#allocation3 + $0x60] sm:$0xff] %v940_v59  ;;  %v2025_v60 = vpop.f32.mrb[6].mxu0  ;;  %v2033_v61 = vpop.f32.mrb[6].mxu1 }
 0x2c8   : > { %966 = vst [vmem:[#allocation3 + $0x38] sm:$0xff] %v2025_v60  ;;  %974 = vst [vmem:[#allocation3 + $0x78] sm:$0xff] %v2033_v61  ;;  %v911_v62 = vpop.f32.mrb[7].mxu0  ;;  %v943_v63 = vpop.f32.mrb[7].mxu1 }
 0x2c9   : > { %964 = vst [vmem:[#allocation3 + $0x28] sm:$0xff] %v911_v62  ;;  %972 = vst [vmem:[#allocation3 + $0x68] sm:$0xff] %v943_v63 }
 0x2ca PF: > { %v2304_v0 = vld [vmem:[%s2877_s21] sm:$0xff]   ;;  %v2305_v1 = vld [vmem:[%s2877_s21 + $0x8] sm:$0xff]   ;;  %v2306_v2 = vld [vmem:[%s2877_s21 + $0x10] sm:$0xff]   ;;  %s3162_s24 = sld [smem:[#allocation18_spill]] }
 0x2cb   : > { %2034 = vmatprep.subr.bf16.mxu0 %v2304_v0  ;;  %v2307_v3 = vld [vmem:[%s2877_s21 + $0x18] sm:$0xff]   ;;  %v1031_v4 = vld [vmem:[#allocation3] sm:$0xff]  ;;  %v1032_v5 = vld [vmem:[#allocation3 + $0x8] sm:$0xff] }
 0x2cc   : > { %2035 = vmatpush3.bf16.msra.mxu0 %v2304_v0  ;;  %v1047_v6 = vpack.c.bf16 %v1032_v5, %v1031_v4  ;;  %v2308_v7 = vld [vmem:[%s2877_s21 + $0x20] sm:$0xff]   ;;  %v2313_v9 = vld [vmem:[%s2883_s22 + $0x8] sm:$0xff]   ;;  %v2314_v11 = vld [vmem:[%s2883_s22 + $0x10] sm:$0xff]  }
 0x2cd   : > { %2036 = vmatprep.subr.bf16.mxu0 %v2305_v1  ;;  %v2312_v8 = vld [vmem:[%s2883_s22] sm:$0xff]   ;;  %v2309_v10 = vld [vmem:[%s2877_s21 + $0x28] sm:$0xff]   ;;  %v2310_v12 = vld [vmem:[%s2877_s21 + $0x30] sm:$0xff]  }
 0x2ce   : > { %2050 = vmatprep.mubr.bf16.mxu0 %v1047_v6  ;;  %2066 = vmatprep.subr.bf16.mxu1 %v2312_v8  ;;  %v2315_v13 = vld [vmem:[%s2883_s22 + $0x18] sm:$0xff]   ;;  %v2316_v15 = vld [vmem:[%s2883_s22 + $0x20] sm:$0xff]   ;;  %v1033_v16 = vld [vmem:[#allocation3 + $0x10] sm:$0xff] }
 0x2cf   : > { %2067 = vmatpush3.bf16.msra.mxu1 %v2312_v8  ;;  %v2311_v14 = vld [vmem:[%s2877_s21 + $0x38] sm:$0xff]   ;;  %v1035_v18 = vld [vmem:[#allocation3 + $0x20] sm:$0xff]  ;;  %v2317_v21 = vld [vmem:[%s2883_s22 + $0x28] sm:$0xff]  }
 0x2d0   : > { %2037 = vmatpush3.bf16.msra.mxu0 %v2305_v1  ;;  %2068 = vmatprep.subr.bf16.mxu1 %v2313_v9  ;;  %v1034_v17 = vld [vmem:[#allocation3 + $0x18] sm:$0xff]  ;;  %v1036_v19 = vld [vmem:[#allocation3 + $0x28] sm:$0xff]  ;;  %v1037_v23 = vld [vmem:[#allocation3 + $0x30] sm:$0xff]  ;;  %p1872_p6 = scmp.ge.s32.totalorder %s3162_s24, 4 }
 0x2d1   : > { %2038 = vmatprep.subr.bf16.mxu0 %v2306_v2  ;;  %v1048_v20 = vpack.c.bf16 %v1034_v17, %v1033_v16  ;;  %v1049_v22 = vpack.c.bf16 %v1036_v19, %v1035_v18  ;;  %v1038_v24 = vld [vmem:[#allocation3 + $0x38] sm:$0xff]  ;;  %v1039_v25 = vld [vmem:[#allocation3 + $0x40] sm:$0xff]  ;;  %v1040_v26 = vld [vmem:[#allocation3 + $0x48] sm:$0xff]  ;;  %s1445_s20 = sshra.s32 (!%p1872_p6), %s2909_s27, 4 }
 0x2d2   : > { %v1050_v27 = vpack.c.bf16 %v1038_v24, %v1037_v23  ;;  %v1051_v28 = vpack.c.bf16 %v1040_v26, %v1039_v25  ;;  %v1041_v29 = vld [vmem:[#allocation3 + $0x50] sm:$0xff]  ;;  %v1042_v30 = vld [vmem:[#allocation3 + $0x58] sm:$0xff]  ;;  %v1043_v31 = vld [vmem:[#allocation3 + $0x60] sm:$0xff]  ;;  %s1873_s0 = sshll.u32 (!%p1872_p6), %s1445_s20, 3 }
 0x2d3   : > { %2069 = vmatpush3.bf16.msra.mxu1 %v2313_v9  ;;  %v1044_v32 = vld [vmem:[#allocation3 + $0x68] sm:$0xff]  ;;  %v1052_v33 = vpack.c.bf16 %v1042_v30, %v1041_v29  ;;  %v1045_v35 = vld [vmem:[#allocation3 + $0x70] sm:$0xff]  ;;  %v1046_v36 = vld [vmem:[#allocation3 + $0x78] sm:$0xff]  ;;  %s1448_s1 = scalar_lea.vmem (!%p1872_p6), [#allocation2], %s1873_s0 }
 0x2d4   : > { %2039 = vmatpush3.bf16.msra.mxu0 %v2306_v2  ;;  %2070 = vmatprep.subr.bf16.mxu1 %v2314_v11  ;;  %v1053_v34 = vpack.c.bf16 %v1044_v32, %v1043_v31  ;;  %v1054_v37 = vpack.c.bf16 %v1046_v36, %v1045_v35  ;;  %v2318_v38 = vld [vmem:[%s2883_s22 + $0x30] sm:$0xff]   ;;  %v2319_v39 = vld [vmem:[%s2883_s22 + $0x38] sm:$0xff]   ;;  %v1854_v40 = vld [vmem:[%s450_s3] ss:$0 sm:$0xff] }
 0x2d5   : > { %2040 = vmatprep.subr.bf16.mxu0 %v2307_v3 }
 0x2d7   : > { %2071 = vmatpush3.bf16.msra.mxu1 %v2314_v11 }
 0x2d8   : > { %2041 = vmatpush3.bf16.msra.mxu0 %v2307_v3  ;;  %2072 = vmatprep.subr.bf16.mxu1 %v2315_v13 }
 0x2d9   : > { %2042 = vmatprep.subr.bf16.mxu0 %v2308_v7 }
 0x2db   : > { %2073 = vmatpush3.bf16.msra.mxu1 %v2315_v13 }
 0x2dc   : > { %2043 = vmatpush3.bf16.msra.mxu0 %v2308_v7  ;;  %2074 = vmatprep.subr.bf16.mxu1 %v2316_v15 }
 0x2dd   : > { %2044 = vmatprep.subr.bf16.mxu0 %v2309_v10 }
 0x2df   : > { %2075 = vmatpush3.bf16.msra.mxu1 %v2316_v15 }
 0x2e0   : > { %2045 = vmatpush3.bf16.msra.mxu0 %v2309_v10  ;;  %2076 = vmatprep.subr.bf16.mxu1 %v2317_v21 }
 0x2e1   : > { %2046 = vmatprep.subr.bf16.mxu0 %v2310_v12 }
 0x2e3   : > { %2077 = vmatpush3.bf16.msra.mxu1 %v2317_v21 }
 0x2e4   : > { %2047 = vmatpush3.bf16.msra.mxu0 %v2310_v12  ;;  %2078 = vmatprep.subr.bf16.mxu1 %v2318_v38 }
 0x2e5   : > { %2048 = vmatprep.subr.bf16.mxu0 %v2311_v14 }
 0x2e7   : > { %2079 = vmatpush3.bf16.msra.mxu1 %v2318_v38 }
 0x2e8   : > { %2049 = vmatpush3.bf16.msra.mxu0 %v2311_v14  ;;  %2080 = vmatprep.subr.bf16.mxu1 %v2319_v39 }
 0x2eb   : > { %2051 = vmatmul.mubr.bf16.vlgmr.msra.gmra.mrb[0].mxu0 %v1048_v20  ;;  %2081 = vmatpush3.bf16.msra.mxu1 %v2319_v39 }
 0x2ec   : > { %2054 = vmatprep.mubr.bf16.mxu0 %v1049_v22 }
 0x2f3   : > { %2055 = vmatmul.mubr.bf16.gmra.mrb[4].mxu0 %v1050_v27 }
 0x2f4   : > { %2058 = vmatprep.mubr.bf16.mxu0 %v1051_v28 }
 0x2fb   : > { %2059 = vmatmul.mubr.bf16.gmra.mrb[8].mxu0 %v1052_v33  ;;  %v1863_v33 = vld [vmem:[%s453_s26] ss:$0 sm:$0xff] }
 0x2fc   : > { %2062 = vmatprep.mubr.bf16.mxu0 %v1053_v34 }
 0x303   : > { %2063 = vmatmul.mubr.bf16.gmra.mrb[12].mxu0 %v1054_v37 }
 0x3be   : > { %v2052_v41 = vpop.f32.mrb[0].mxu0 }
 0x3bf   : > { %v1169_v42 = vadd.f32 %v2052_v41, %v1854_v40  ;;  %v1160_v43 = vpop.f32.mrb[1].mxu0 }
 0x3c0   : > { %v1161_v44 = vadd.f32 %v1854_v40, %v1160_v43  ;;  %v2053_v45 = vpop.f32.mrb[2].mxu0 }
 0x3c1   : > { %v1172_v46 = vadd.f32 %v2053_v45, %v1854_v40  ;;  %v1163_v47 = vpop.f32.mrb[3].mxu0  ;;  %v1225_v49 = vmax.f32 %v1169_v42, 0.0 }
 0x3c2   : > { %v1164_v48 = vadd.f32 %v1854_v40, %v1163_v47  ;;  %v1223_v51 = vmax.f32 %v1161_v44, 0.0 }
 0x3c3   : > { %v1226_v50 = vmax.f32 %v1172_v46, 0.0 }
 0x3c4   : > { %v1224_v52 = vmax.f32 %v1164_v48, 0.0 }
 0x3c5   : > { %v1240_v53 = vpack.c.bf16 %v1226_v50, %v1225_v49 }
 0x3c6   : > { %v2056_v54 = vpop.f32.mrb[4].mxu0  ;;  %v1239_v55 = vpack.c.bf16 %v1224_v52, %v1223_v51 }
 0x3c7   : > { %v1185_v56 = vadd.f32 %v2056_v54, %v1854_v40  ;;  %v1176_v57 = vpop.f32.mrb[5].mxu0 }
 0x3c8   : > { %v1177_v58 = vadd.f32 %v1854_v40, %v1176_v57  ;;  %v2057_v59 = vpop.f32.mrb[6].mxu0  ;;  %2082 = vmatprep.mubr.bf16.mxu1 %v1239_v55 }
 0x3c9   : > { %v1188_v60 = vadd.f32 %v2057_v59, %v1854_v40  ;;  %v1179_v61 = vpop.f32.mrb[7].mxu0  ;;  %2083 = vmatmul.mubr.bf16.vlgmr.msra.gmra.mrb[0].mxu1 %v1240_v53  ;;  %v1229_v63 = vmax.f32 %v1185_v56, 0.0 }
 0x3ca   : > { %v1180_v62 = vadd.f32 %v1854_v40, %v1179_v61  ;;  %v1227_v1 = vmax.f32 %v1177_v58, 0.0 }
 0x3cb   : > { %v1230_v0 = vmax.f32 %v1188_v60, 0.0 }
 0x3cc   : > { %v1228_v2 = vmax.f32 %v1180_v62, 0.0 }
 0x3cd   : > { %v1242_v3 = vpack.c.bf16 %v1230_v0, %v1229_v63 }
 0x3ce   : > { %v1241_v4 = vpack.c.bf16 %v1228_v2, %v1227_v1  ;;  %v2060_v5 = vpop.f32.mrb[8].mxu0 }
 0x3cf   : > { %v1201_v6 = vadd.f32 %v2060_v5, %v1854_v40  ;;  %v1192_v7 = vpop.f32.mrb[9].mxu0 }
 0x3d0   : > { %v1193_v8 = vadd.f32 %v1854_v40, %v1192_v7  ;;  %v2061_v9 = vpop.f32.mrb[10].mxu0  ;;  %2086 = vmatprep.mubr.bf16.mxu1 %v1241_v4 }
 0x3d1   : > { %v1204_v10 = vadd.f32 %v2061_v9, %v1854_v40  ;;  %v1195_v11 = vpop.f32.mrb[11].mxu0  ;;  %2087 = vmatmul.mubr.bf16.gmra.mrb[4].mxu1 %v1242_v3  ;;  %v1233_v13 = vmax.f32 %v1201_v6, 0.0 }
 0x3d2   : > { %v1196_v12 = vadd.f32 %v1854_v40, %v1195_v11  ;;  %v1231_v15 = vmax.f32 %v1193_v8, 0.0 }
 0x3d3   : > { %v1234_v14 = vmax.f32 %v1204_v10, 0.0 }
 0x3d4   : > { %v1232_v16 = vmax.f32 %v1196_v12, 0.0 }
 0x3d5   : > { %v1244_v17 = vpack.c.bf16 %v1234_v14, %v1233_v13 }
 0x3d6   : > { %v1243_v18 = vpack.c.bf16 %v1232_v16, %v1231_v15  ;;  %v2064_v19 = vpop.f32.mrb[12].mxu0 }
 0x3d7   : > { %v1217_v20 = vadd.f32 %v2064_v19, %v1854_v40  ;;  %v1208_v21 = vpop.f32.mrb[13].mxu0 }
 0x3d8   : > { %v1209_v22 = vadd.f32 %v1854_v40, %v1208_v21  ;;  %v2065_v23 = vpop.f32.mrb[14].mxu0  ;;  %2090 = vmatprep.mubr.bf16.mxu1 %v1243_v18 }
 0x3d9   : > { %v1220_v24 = vadd.f32 %v2065_v23, %v1854_v40  ;;  %v1211_v25 = vpop.f32.mrb[15].mxu0  ;;  %2091 = vmatmul.mubr.bf16.gmra.mrb[8].mxu1 %v1244_v17  ;;  %v1237_v27 = vmax.f32 %v1217_v20, 0.0 }
 0x3da   : > { %v1212_v26 = vadd.f32 %v1854_v40, %v1211_v25  ;;  %v1235_v29 = vmax.f32 %v1209_v22, 0.0 }
 0x3db   : > { %v1238_v28 = vmax.f32 %v1220_v24, 0.0 }
 0x3dc   : > { %v1236_v30 = vmax.f32 %v1212_v26, 0.0 }
 0x3dd   : > { %v1246_v31 = vpack.c.bf16 %v1238_v28, %v1237_v27 }
 0x3de   : > { %v1245_v32 = vpack.c.bf16 %v1236_v30, %v1235_v29 }
 0x3e0   : > { %2094 = vmatprep.mubr.bf16.mxu1 %v1245_v32 }
 0x3e1   : > { %2095 = vmatmul.mubr.bf16.gmra.mrb[12].mxu1 %v1246_v31 }
 0x49c   : > { %v2084_v34 = vpop.f32.mrb[0].mxu1 }
 0x49d   : > { %v2951_v35 = vadd.f32 %v2084_v34, %v1863_v33  ;;  %v1352_v36 = vpop.f32.mrb[1].mxu1 }
 0x49e   : > { %v2953_v37 = vadd.f32 %v1863_v33, %v1352_v36  ;;  %v2085_v38 = vpop.f32.mrb[2].mxu1 }
 0x49f   : > { %v1417_v39 = vmax.f32 %v2951_v35, 0.0  ;;  %v2956_v40 = vadd.f32 %v2085_v38, %v1863_v33  ;;  %v1355_v41 = vpop.f32.mrb[3].mxu1 }
 0x4a0   : > { %v1415_v42 = vmax.f32 %v2953_v37, 0.0  ;;  %v2959_v43 = vadd.f32 %v1863_v33, %v1355_v41 }
 0x4a1   : > { %v1418_v44 = vmax.f32 %v2956_v40, 0.0 }
 0x4a2   : > { %v1416_v45 = vmax.f32 %v2959_v43, 0.0 }
 0x4a3   : > { %v1438_v19 = vpack.c.bf16 (!%p1872_p6), %v1418_v44, %v1417_v39 }
 0x4a4   : > { %v2088_v46 = vpop.f32.mrb[4].mxu1  ;;  %v1437_v18 = vpack.c.bf16 (!%p1872_p6), %v1416_v45, %v1415_v42 }
 0x4a5   : > { %v2963_v47 = vadd.f32 %v2088_v46, %v1863_v33  ;;  %v1368_v48 = vpop.f32.mrb[5].mxu1  ;;  %1450 = vst [vmem:[%s1448_s1 + $0x8] sm:$0xff] (!%p1872_p6), %v1438_v19 }
 0x4a6   : > { %v2965_v49 = vadd.f32 %v1863_v33, %v1368_v48  ;;  %v2089_v50 = vpop.f32.mrb[6].mxu1  ;;  %1449 = vst [vmem:[%s1448_s1] sm:$0xff] (!%p1872_p6), %v1437_v18 }
 0x4a7   : > { %v1421_v51 = vmax.f32 %v2963_v47, 0.0  ;;  %v2968_v52 = vadd.f32 %v2089_v50, %v1863_v33  ;;  %v1371_v53 = vpop.f32.mrb[7].mxu1 }
 0x4a8   : > { %v1419_v54 = vmax.f32 %v2965_v49, 0.0  ;;  %v2971_v55 = vadd.f32 %v1863_v33, %v1371_v53 }
 0x4a9   : > { %v1422_v56 = vmax.f32 %v2968_v52, 0.0 }
 0x4aa   : > { %v1420_v57 = vmax.f32 %v2971_v55, 0.0 }
 0x4ab   : > { %v1440_v21 = vpack.c.bf16 (!%p1872_p6), %v1422_v56, %v1421_v51 }
 0x4ac   : > { %v2092_v58 = vpop.f32.mrb[8].mxu1  ;;  %v1439_v20 = vpack.c.bf16 (!%p1872_p6), %v1420_v57, %v1419_v54 }
 0x4ad   : > { %v2975_v59 = vadd.f32 %v2092_v58, %v1863_v33  ;;  %v1384_v60 = vpop.f32.mrb[9].mxu1  ;;  %1452 = vst [vmem:[%s1448_s1 + $0x18] sm:$0xff] (!%p1872_p6), %v1440_v21 }
 0x4ae   : > { %v1385_v61 = vadd.f32 %v1863_v33, %v1384_v60  ;;  %v2093_v62 = vpop.f32.mrb[10].mxu1  ;;  %1451 = vst [vmem:[%s1448_s1 + $0x10] sm:$0xff] (!%p1872_p6), %v1439_v20 }
 0x4af   : > { %v1425_v63 = vmax.f32 %v2975_v59, 0.0  ;;  %v2978_v0 = vadd.f32 %v2093_v62, %v1863_v33  ;;  %v1387_v1 = vpop.f32.mrb[11].mxu1 }
 0x4b0   : > { %v1423_v2 = vmax.f32 %v1385_v61, 0.0  ;;  %v1388_v3 = vadd.f32 %v1863_v33, %v1387_v1 }
 0x4b1   : > { %v1426_v4 = vmax.f32 %v2978_v0, 0.0 }
 0x4b2   : > { %v1424_v5 = vmax.f32 %v1388_v3, 0.0 }
 0x4b3   : > { %v1442_v23 = vpack.c.bf16 (!%p1872_p6), %v1426_v4, %v1425_v63 }
 0x4b4   : > { %v2096_v6 = vpop.f32.mrb[12].mxu1  ;;  %1434 = sbr.rel (%p1872_p6) target bundleno = 1215 (0x4bf), region = 104  ;;  %v1441_v22 = vpack.c.bf16 (!%p1872_p6), %v1424_v5, %v1423_v2 }
 0x4b5   : > { %v2981_v7 = vadd.f32 %v2096_v6, %v1863_v33  ;;  %v1400_v8 = vpop.f32.mrb[13].mxu1  ;;  %1454 = vst [vmem:[%s1448_s1 + $0x28] sm:$0xff] (!%p1872_p6), %v1442_v23 }
 0x4b6   : > { %v2983_v9 = vadd.f32 %v1863_v33, %v1400_v8  ;;  %v2097_v10 = vpop.f32.mrb[14].mxu1  ;;  %1453 = vst [vmem:[%s1448_s1 + $0x20] sm:$0xff] (!%p1872_p6), %v1441_v22 }
 0x4b7   : > { %v1429_v11 = vmax.f32 %v2981_v7, 0.0  ;;  %v2986_v12 = vadd.f32 %v2097_v10, %v1863_v33  ;;  %v1403_v13 = vpop.f32.mrb[15].mxu1 }
 0x4b8   : > { %v1427_v14 = vmax.f32 %v2983_v9, 0.0  ;;  %v2989_v15 = vadd.f32 %v1863_v33, %v1403_v13 }
 0x4b9   : > { %v1430_v16 = vmax.f32 %v2986_v12, 0.0 }
 0x4ba   : > { %v1428_v17 = vmax.f32 %v2989_v15, 0.0 }
 0x4bb   : > { %v1444_v25 = vpack.c.bf16 %v1430_v16, %v1429_v11 }
 0x4bc   : > { %v1443_v24 = vpack.c.bf16 %v1428_v17, %v1427_v14 }
 0x4bd   : > { %1456 = vst [vmem:[%s1448_s1 + $0x38] sm:$0xff] %v1444_v25 }
 0x4be   : > { %1455 = vst [vmem:[%s1448_s1 + $0x30] sm:$0xff] %v1443_v24 }
 0x4bf PF: > { %s3163_s3 = sld [smem:[#allocation18_spill]] }
 0x4c5   : > { %p1874_p4 = scmp.ne.s32.totalorder %s3163_s3, 4 }
 0x4c6   : > { %v2320_v26 = vld [vmem:[#allocation11] sm:$0xff] (!%p1874_p4)   ;;  %v2321_v27 = vld [vmem:[#allocation11 + $0x8] sm:$0xff] (!%p1874_p4)   ;;  %v1461_v28 = vpack.c.bf16 (!%p1874_p4), %v1416_v45, %v1415_v42  ;;  %v1465_v29 = vpack.c.bf16 (!%p1874_p4), %v1424_v5, %v1423_v2  ;;  %v2322_v30 = vld [vmem:[#allocation11 + $0x10] sm:$0xff] (!%p1874_p4)   ;;  %v1462_v37 = vpack.c.bf16 (!%p1874_p4), %v1418_v44, %v1417_v39  ;;  %v1466_v38 = vpack.c.bf16 (!%p1874_p4), %v1426_v4, %v1425_v63  ;;  %s3164_s17 = sld [smem:[#allocation26_spill]] (!%p1874_p4) }
 0x4c7   : > { %1460 = sbr.rel (%p1874_p4) target bundleno = 1481 (0x5c9), region = 108  ;;  %2098 = vmatprep.subr.bf16.mxu0 (!%p1874_p4), %v2320_v26  ;;  %2162 = vmatprep.subr.bf16.mxu1 (!%p1874_p4), %v2320_v26  ;;  %v2323_v31 = vld [vmem:[#allocation11 + $0x18] sm:$0xff] (!%p1874_p4)   ;;  %v2324_v32 = vld [vmem:[#allocation11 + $0x20] sm:$0xff] (!%p1874_p4)   ;;  %v2325_v33 = vld [vmem:[#allocation11 + $0x28] sm:$0xff] (!%p1874_p4)   ;;  %v1463_v41 = vpack.c.bf16 (!%p1874_p4), %v1420_v57, %v1419_v54  ;;  %v1467_v35 = vpack.c.bf16 (!%p1874_p4), %v1428_v17, %v1427_v14  ;;  %v1464_v39 = vpack.c.bf16 (!%p1874_p4), %v1422_v56, %v1421_v51 }
 0x4c8   : > { %2099 = vmatpush3.bf16.msra.mxu0 (!%p1874_p4), %v2320_v26  ;;  %2170 = vmatpush3.bf16.msra.mxu1 (!%p1874_p4), %v2320_v26  ;;  %v2326_v34 = vld [vmem:[#allocation11 + $0x30] sm:$0xff] (!%p1874_p4)   ;;  %v2327_v36 = vld [vmem:[#allocation11 + $0x38] sm:$0xff] (!%p1874_p4)   ;;  %v1468_v40 = vpack.c.bf16 (!%p1874_p4), %v1430_v16, %v1429_v11 }
 0x4c9   : > { %2100 = vmatprep.subr.bf16.mxu0 (!%p1874_p4), %v2321_v27  ;;  %2163 = vmatprep.subr.bf16.mxu1 (!%p1874_p4), %v2321_v27 }
 0x4ca   : > { %2114 = vmatprep.mubr.bf16.mxu0 (!%p1874_p4), %v1461_v28  ;;  %2122 = vmatprep.mubr.bf16.mxu1 (!%p1874_p4), %v1465_v29 }
 0x4cc   : > { %2101 = vmatpush3.bf16.msra.mxu0 (!%p1874_p4), %v2321_v27  ;;  %2171 = vmatpush3.bf16.msra.mxu1 (!%p1874_p4), %v2321_v27  ;;  %v1875_v42 = vld [vmem:[%s3164_s17] ss:$0 sm:$0xff] (!%p1874_p4) }
 0x4cd   : > { %2102 = vmatprep.subr.bf16.mxu0 (!%p1874_p4), %v2322_v30  ;;  %2164 = vmatprep.subr.bf16.mxu1 (!%p1874_p4), %v2322_v30 }
 0x4d0   : > { %2103 = vmatpush3.bf16.msra.mxu0 %v2322_v30  ;;  %2172 = vmatpush3.bf16.msra.mxu1 %v2322_v30 }
 0x4d1   : > { %2104 = vmatprep.subr.bf16.mxu0 %v2323_v31  ;;  %2165 = vmatprep.subr.bf16.mxu1 %v2323_v31 }
 0x4d4   : > { %2105 = vmatpush3.bf16.msra.mxu0 %v2323_v31  ;;  %2173 = vmatpush3.bf16.msra.mxu1 %v2323_v31 }
 0x4d5   : > { %2106 = vmatprep.subr.bf16.mxu0 %v2324_v32  ;;  %2166 = vmatprep.subr.bf16.mxu1 %v2324_v32 }
 0x4d8   : > { %2107 = vmatpush3.bf16.msra.mxu0 %v2324_v32  ;;  %2174 = vmatpush3.bf16.msra.mxu1 %v2324_v32 }
 0x4d9   : > { %2108 = vmatprep.subr.bf16.mxu0 %v2325_v33  ;;  %2167 = vmatprep.subr.bf16.mxu1 %v2325_v33 }
 0x4dc   : > { %2109 = vmatpush3.bf16.msra.mxu0 %v2325_v33  ;;  %2175 = vmatpush3.bf16.msra.mxu1 %v2325_v33 }
 0x4dd   : > { %2110 = vmatprep.subr.bf16.mxu0 %v2326_v34  ;;  %2168 = vmatprep.subr.bf16.mxu1 %v2326_v34 }
 0x4e0   : > { %2111 = vmatpush3.bf16.msra.mxu0 %v2326_v34  ;;  %2176 = vmatpush3.bf16.msra.mxu1 %v2326_v34 }
 0x4e1   : > { %2112 = vmatprep.subr.bf16.mxu0 %v2327_v36  ;;  %2169 = vmatprep.subr.bf16.mxu1 %v2327_v36 }
 0x4e4   : > { %2113 = vmatpush3.bf16.msra.mxu0 %v2327_v36  ;;  %2177 = vmatpush3.bf16.msra.mxu1 %v2327_v36 }
 0x4e7   : > { %2115 = vmatmul.mubr.bf16.vlgmr.msra.gmra.mrb[0].mxu0 %v1462_v37  ;;  %2123 = vmatmul.mubr.bf16.vlgmr.msra.gmra.mrb[0].mxu1 %v1466_v38 }
 0x4e8   : > { %2118 = vmatprep.mubr.bf16.mxu0 %v1463_v41  ;;  %2126 = vmatprep.mubr.bf16.mxu1 %v1467_v35 }
 0x4ef   : > { %2119 = vmatmul.mubr.bf16.gmra.mrb[4].mxu0 %v1464_v39  ;;  %2127 = vmatmul.mubr.bf16.gmra.mrb[4].mxu1 %v1468_v40 }
 0x5ba   : > { %v2116_v43 = vpop.f32.mrb[0].mxu0  ;;  %v2124_v44 = vpop.f32.mrb[0].mxu1 }
 0x5bb   : > { %v1583_v45 = vadd.f32 %v2116_v43, %v1875_v42  ;;  %v1615_v46 = vadd.f32 %v2124_v44, %v1875_v42  ;;  %v1574_v48 = vpop.f32.mrb[1].mxu0  ;;  %v1606_v47 = vpop.f32.mrb[1].mxu1 }
 0x5bc   : > { %v1575_v49 = vadd.f32 %v1875_v42, %v1574_v48  ;;  %v1607_v50 = vadd.f32 %v1875_v42, %v1606_v47  ;;  %v2117_v51 = vpop.f32.mrb[2].mxu0  ;;  %v2125_v52 = vpop.f32.mrb[2].mxu1 }
 0x5bd   : > { %1639 = vst [vmem:[#allocation12 + $0x10] sm:$0xff] %v1583_v45  ;;  %1647 = vst [vmem:[#allocation12 + $0x50] sm:$0xff] %v1615_v46  ;;  %v1586_v53 = vadd.f32 %v2117_v51, %v1875_v42  ;;  %v1618_v54 = vadd.f32 %v2125_v52, %v1875_v42  ;;  %v1577_v55 = vpop.f32.mrb[3].mxu0  ;;  %v1609_v56 = vpop.f32.mrb[3].mxu1 }
 0x5be   : > { %1637 = vst [vmem:[#allocation12] sm:$0xff] %v1575_v49  ;;  %1645 = vst [vmem:[#allocation12 + $0x40] sm:$0xff] %v1607_v50  ;;  %v1578_v57 = vadd.f32 %v1875_v42, %v1577_v55  ;;  %v1610_v58 = vadd.f32 %v1875_v42, %v1609_v56 }
 0x5bf   : > { %1640 = vst [vmem:[#allocation12 + $0x18] sm:$0xff] %v1586_v53  ;;  %1648 = vst [vmem:[#allocation12 + $0x58] sm:$0xff] %v1618_v54 }
 0x5c0   : > { %1638 = vst [vmem:[#allocation12 + $0x8] sm:$0xff] %v1578_v57  ;;  %1646 = vst [vmem:[#allocation12 + $0x48] sm:$0xff] %v1610_v58 }
 0x5c2   : > { %v2120_v59 = vpop.f32.mrb[4].mxu0  ;;  %v2128_v60 = vpop.f32.mrb[4].mxu1 }
 0x5c3   : > { %v1599_v61 = vadd.f32 %v2120_v59, %v1875_v42  ;;  %v1631_v62 = vadd.f32 %v2128_v60, %v1875_v42  ;;  %v1590_v63 = vpop.f32.mrb[5].mxu0  ;;  %v1622_v0 = vpop.f32.mrb[5].mxu1 }
 0x5c4   : > { %v1591_v1 = vadd.f32 %v1875_v42, %v1590_v63  ;;  %v1623_v2 = vadd.f32 %v1875_v42, %v1622_v0  ;;  %v2121_v3 = vpop.f32.mrb[6].mxu0  ;;  %v2129_v4 = vpop.f32.mrb[6].mxu1 }
 0x5c5   : > { %1643 = vst [vmem:[#allocation12 + $0x30] sm:$0xff] %v1599_v61  ;;  %1651 = vst [vmem:[#allocation12 + $0x70] sm:$0xff] %v1631_v62  ;;  %v1602_v5 = vadd.f32 %v2121_v3, %v1875_v42  ;;  %v1634_v6 = vadd.f32 %v2129_v4, %v1875_v42  ;;  %v1593_v7 = vpop.f32.mrb[7].mxu0  ;;  %v1625_v8 = vpop.f32.mrb[7].mxu1 }
 0x5c6   : > { %1641 = vst [vmem:[#allocation12 + $0x20] sm:$0xff] %v1591_v1  ;;  %1649 = vst [vmem:[#allocation12 + $0x60] sm:$0xff] %v1623_v2  ;;  %v1594_v9 = vadd.f32 %v1875_v42, %v1593_v7  ;;  %v1626_v10 = vadd.f32 %v1875_v42, %v1625_v8 }
 0x5c7   : > { %1644 = vst [vmem:[#allocation12 + $0x38] sm:$0xff] %v1602_v5  ;;  %1652 = vst [vmem:[#allocation12 + $0x78] sm:$0xff] %v1634_v6 }
 0x5c8   : > { %1642 = vst [vmem:[#allocation12 + $0x28] sm:$0xff] %v1594_v9  ;;  %1650 = vst [vmem:[#allocation12 + $0x68] sm:$0xff] %v1626_v10 }
 0x5c9 PF: > { %p2222_p2 = scmp.eq.s32.totalorder %s2650_s11, 4  ;;  %s2573_s26 = smov [#allocation12]  }
 0x5ca   : > { %s1662_s23 = sshll.u32 %s2573_s26, 4  ;;  %s1663_s23 = int_to_ptr.vmem [resolvable:$true] %s1662_s23 }
 0x5cb   : > { %s2472_s25 = scalar_lea.vmem %s1663_s23, 2048  ;;  %p2479_p12 = scmp.lt.s32.totalorder %s1663_s23, %s1663_s23 }
 0x5cc   : > { %p2473_p5 = scmp.ne.s32.totalorder %s1663_s23, %s2472_s25  ;;  %p2480_p1 = scmp.lt.s32.totalorder %s2472_s25, %s2472_s25 }
 0x5ce   : > { %p2474_p9 = pnand %p2473_p5, %p2222_p2  ;;  %p2481_p3 = por %p2480_p1, %p2479_p12 }
 0x5d0   : > { %p2475_p13 = pneg %p2474_p9 }
 0x5d2   : > { %p2482_p8 = pnand %p2481_p3, %p2475_p13 }
 0x5d4   : > { %2485 = shalt.err (!%p2482_p8)
}
 0x5d5   : > { %s3165_s27 = sld [smem:[#allocation27_spill]] }
 0x5db   : > { %s3166_s16 = smov %s3165_s27  ;;  %s2486_s18 = scalar_lea.hbm %s3165_s27, 2048 }
 0x5dc   : > { %p2487_p11 = scmp.ne.s32.totalorder %s3166_s16, %s2486_s18  ;;  %p2492_p10 = scmp.lt.u32.totalorder %s2486_s18, %s3166_s16 }
 0x5de   : > { %p2488_p7 = pnand %p2487_p11, %p2222_p2 }
 0x5e0   : > { %p2489_p0 = pneg %p2488_p7 }
 0x5e2   : > { %p2494_p6 = pnand %p2492_p10, %p2489_p0 }
 0x5e4   : > { %2497 = shalt.err (!%p2494_p6)
}
 0x5e5   : > { %s2574_s7 = smov 128   ;;  %s2575_s22 = smov 8  }
 0x5e6   : > { %2195 = dma.vmem_to_hbm [thread:$0]  (%p2222_p2), %s1663_s23, 2048, %s3166_s16, [#allocation6], %s2574_s7, %s2574_s7, %s2575_s22  }
 0x5e7   : > { %2539 = dma.done.wait (%p2222_p2), [#allocation6], 2048  }
 0x5e8   : > { %2541 = vsyncadd (%p2222_p2), [#allocation6], 4294965248 }
 0x5e9 PF: > { %s3167_s24 = sld [smem:[#allocation19_spill]]  ;;  %s3168_s20 = sld [smem:[#allocation20_spill]] }
 0x5ea   : > { %s3169_s27 = smov %s2548_s28  ;;  %s3170_s28 = smov %s2552_s29 }
 0x5eb   : > { %s3171_s29 = smov %s2805_s12  ;;  %s3172_s30 = smov %s2560_s9 }
 0x5ef   : > { %s21_s10 = sadd.s32 1, %s3167_s24   ;;  %s3173_s9 = smov %s3168_s20 }
 0x5f0   : > { %p18_p4 = scmp.ge.s32.totalorder %s21_s10, 7  }
 0x5f2   :  { %20 = sbr.rel (!%p18_p4) target bundleno = 13 (0xd), region = 158 }
 0x5f9   :  { %1678 = vsyncpa [#allocation5], 1 }
 0x5fa   :  { %1680 = vsyncpa [#allocation5 + $0x1], 1 }
 0x5fb   :  { %1681 = vsyncpa [#allocation8], 1 }
 0x5fc   :  { %1682 = vsyncpa [#allocation6], 1 }
 0x5fd   :  { %1684 = vsyncpa [#allocation6 + $0x1], 1 }

</bundles_post_ra>
